<compile_context>
chip_gen: v7x
topology: tpu7x:2x2x1
jax: 0.10.0
libtpu: 0.0.40
codegen_flags: <defaults>
</compile_context>

<pallas_src>
import functools

import jax
import jax.numpy as jnp
import numpy as np
from jax.experimental import pallas as pl
from jax.experimental.pallas import tpu as pltpu


def encoder_lstm_kernel(xw0_ref, lens_ref, wih_ref, whh_ref, b_ref,
                        hfin_ref, cfin_ref,
                        x_scr, xw_scr, *, T, B, H):
    """One LSTM layer per grid step (grid = (n_layers,), sequential).

    xw0_ref : (T*B, 4H)  layer-0 input projection, precomputed in JAX
    lens_ref: (B, 1)     int32 sequence lengths (padded rows = 0)
    wih_ref : (1, H, 4H) input->gate weights for this layer (dummy for l=0)
    whh_ref : (1, H, 4H) hidden->gate weights for this layer
    b_ref   : (1, 1, 4H) fused bias for this layer (dummy for l=0)
    x_scr   : (T*B, H)   VMEM: layer output / next-layer input (persists)
    xw_scr  : (T*B, 4H)  VMEM: this layer's precomputed input projections
    """
    l = pl.program_id(0)

    # ---- per-layer input projection, hoisted out of the time recurrence ----
    @pl.when(l == 0)
    def _():
        # Layer 0: projection (embedded @ Wih0^T + b0) was precomputed in JAX.
        xw_scr[...] = xw0_ref[...]

    @pl.when(l > 0)
    def _():
        # Layers > 0: one big (T*B, H) @ (H, 4H) MXU matmul over the whole
        # sequence produced by the previous layer (resident in VMEM).
        xw_scr[...] = (
            jnp.dot(x_scr[...], wih_ref[0], preferred_element_type=jnp.float32)
            + b_ref[0])

    whh = whh_ref[0]            # (H, 4H), resident for the whole layer
    lens = lens_ref[...]        # (B, 1) int32

    h = jnp.zeros((B, H), jnp.float32)
    c = jnp.zeros((B, H), jnp.float32)

    # Time recurrence. T is small & static here -> fully unrolled; only the
    # (B, H) @ (H, 4H) matmul is serial per step.
    # TODO(synk): for long sequences switch to lax.fori_loop over time blocks.
    for t in range(T):
        gates = (jnp.dot(h, whh, preferred_element_type=jnp.float32)
                 + xw_scr[t * B:(t + 1) * B, :])          # (B, 4H), [i f g o]
        i = jax.nn.sigmoid(gates[:, 0 * H:1 * H])
        f = jax.nn.sigmoid(gates[:, 1 * H:2 * H])
        g = jnp.tanh(gates[:, 2 * H:3 * H])
        o = jax.nn.sigmoid(gates[:, 3 * H:4 * H])

        c_new = f * c + i * g
        h_new = o * jnp.tanh(c_new)

        # Masked update: padded timesteps keep the previous state
        # (reproduces pack_padded_sequence's "state frozen at last valid step").
        m = (lens > t).astype(jnp.float32)                # (B, 1)
        h = m * h_new + (1.0 - m) * h
        c = m * c_new + (1.0 - m) * c

        # Layer output -> input of the next layer (zeros at padded positions,
        # matching pad_packed_sequence; masked out by the next layer anyway).
        x_scr[t * B:(t + 1) * B, :] = m * h_new

    # Final states written once per layer.
    hfin_ref[0] = h
    cfin_ref[0] = c


def encoder_forward(src, src_len, embedding, layer_params):
    """Pallas implementation of Encoder.forward. Returns (hidden, cell),
    each of shape (n_layers, B, H)."""
    T, B = src.shape
    n_layers = len(layer_params)
    H = layer_params[0][1].shape[0]          # whh_T is (H, 4H)
    G = 4 * H
    B_pad = ((B + 7) // 8) * 8               # pad batch to sublane multiple

    # ---- JAX glue: embedding lookup + (identity) dropout -------------------
    embedded = jnp.take(embedding, src, axis=0)            # (T, B, E)

    # ---- layer-0 input projection hoisted out of the recurrence ------------
    wih0_T, _, b0 = layer_params[0]
    xw0 = jnp.einsum('tbe,eg->tbg', embedded, wih0_T) + b0  # (T, B, 4H)
    xw0 = jnp.pad(xw0, ((0, 0), (0, B_pad - B), (0, 0)))
    xw0 = xw0.reshape(T * B_pad, G)

    # Sequence lengths (padded rows -> 0 so their state stays zero).
    lens = jnp.pad(src_len.astype(jnp.int32), (0, B_pad - B))[:, None]  # (B_pad, 1)

    # Stacked per-layer weights. Layer-0's wih/b slots are unused dummies
    # (its input projection was consumed above); layers >= 1 have input dim H.
    wih_all = jnp.stack([jnp.zeros((H, G), jnp.float32)]
                        + [p[0] for p in layer_params[1:]])        # (L, H, 4H)
    whh_all = jnp.stack([p[1] for p in layer_params])              # (L, H, 4H)
    b_all = jnp.stack([jnp.zeros((1, G), jnp.float32)]
                      + [p[2] for p in layer_params[1:]])          # (L, 1, 4H)

    kernel = functools.partial(encoder_lstm_kernel, T=T, B=B_pad, H=H)

    hfin, cfin = pl.pallas_call(
        kernel,
        out_shape=(
            jax.ShapeDtypeStruct((n_layers, B_pad, H), jnp.float32),
            jax.ShapeDtypeStruct((n_layers, B_pad, H), jnp.float32),
        ),
        grid_spec=pltpu.PrefetchScalarGridSpec(
            num_scalar_prefetch=0,
            grid=(n_layers,),
            in_specs=[
                pl.BlockSpec((T * B_pad, G), lambda l: (0, 0)),   # xw0 (loaded once)
                pl.BlockSpec((B_pad, 1), lambda l: (0, 0)),       # lens (loaded once)
                pl.BlockSpec((1, H, G), lambda l: (l, 0, 0)),     # wih per layer
                pl.BlockSpec((1, H, G), lambda l: (l, 0, 0)),     # whh per layer
                pl.BlockSpec((1, 1, G), lambda l: (l, 0, 0)),     # bias per layer
            ],
            out_specs=[
                pl.BlockSpec((1, B_pad, H), lambda l: (l, 0, 0)),
                pl.BlockSpec((1, B_pad, H), lambda l: (l, 0, 0)),
            ],
            scratch_shapes=[
                pltpu.VMEM((T * B_pad, H), jnp.float32),   # inter-layer activations
                pltpu.VMEM((T * B_pad, G), jnp.float32),   # per-layer input projections
            ],
        ),
        compiler_params=pltpu.CompilerParams(
            dimension_semantics=("arbitrary",)),           # layers are sequential
    )(xw0, lens, wih_all, whh_all, b_all)

    return hfin[:, :B, :], cfin[:, :B, :]


encoder_forward_jit = jax.jit(encoder_forward)


def encoder_reference(src, src_len, embedding, layer_params):
    """Pure-JAX reference (lax.scan) for correctness checking."""
    T, B = src.shape
    embedded = jnp.take(embedding, src, axis=0)
    t_idx = jnp.arange(T, dtype=jnp.int32)[:, None]
    mask = (t_idx < src_len[None, :]).astype(jnp.float32)[..., None]  # (T, B, 1)

    x = embedded
    hs, cs = [], []
    for (wih_T, whh_T, b) in layer_params:
        H = whh_T.shape[0]

        def step(carry, inp):
            h, c = carry
            xt, mt = inp
            gates = xt @ wih_T + h @ whh_T + b
            i = jax.nn.sigmoid(gates[:, 0 * H:1 * H])
            f = jax.nn.sigmoid(gates[:, 1 * H:2 * H])
            g = jnp.tanh(gates[:, 2 * H:3 * H])
            o = jax.nn.sigmoid(gates[:, 3 * H:4 * H])
            c_new = f * c + i * g
            h_new = o * jnp.tanh(c_new)
            h_u = mt * h_new + (1.0 - mt) * h
            c_u = mt * c_new + (1.0 - mt) * c
            return (h_u, c_u), mt * h_new

        init = (jnp.zeros((B, H), jnp.float32), jnp.zeros((B, H), jnp.float32))
        (hfin, cfin), out = jax.lax.scan(step, init, (x, mask))
        x = out
        hs.append(hfin)
        cs.append(cfin)
    return jnp.stack(hs, axis=0), jnp.stack(cs, axis=0)


if __name__ == "__main__":
    # Small shapes consistent with the module.
    INPUT_DIM = 50     # vocab size
    EMB_DIM = 32
    HID_DIM = 32
    N_LAYERS = 2
    T = 8              # seq length
    B = 4              # batch

    key = jax.random.PRNGKey(0)
    k_emb, k_src, *k_layers = jax.random.split(key, 2 + 4 * N_LAYERS)

    # Deterministic parameter init (PyTorch-style uniform(-1/sqrt(H), 1/sqrt(H))).
    bound = 1.0 / np.sqrt(HID_DIM)
    embedding = jax.random.normal(k_emb, (INPUT_DIM, EMB_DIM), jnp.float32)

    layer_params = []
    for l in range(N_LAYERS):
        in_dim = EMB_DIM if l == 0 else HID_DIM
        kw1, kw2, kb1, kb2 = k_layers[4 * l: 4 * l + 4]
        w_ih = jax.random.uniform(kw1, (4 * HID_DIM, in_dim), jnp.float32, -bound, bound)
        w_hh = jax.random.uniform(kw2, (4 * HID_DIM, HID_DIM), jnp.float32, -bound, bound)
        b_ih = jax.random.uniform(kb1, (4 * HID_DIM,), jnp.float32, -bound, bound)
        b_hh = jax.random.uniform(kb2, (4 * HID_DIM,), jnp.float32, -bound, bound)
        # Pre-transpose weights, fuse biases: gates = x @ W_ih^T + h @ W_hh^T + (b_ih + b_hh)
        layer_params.append((w_ih.T, w_hh.T, (b_ih + b_hh)[None, :]))

    # Token ids (T, B) and sorted-descending lengths (pack_padded_sequence default).
    src = jax.random.randint(k_src, (T, B), 0, INPUT_DIM, dtype=jnp.int32)
    src_len = jnp.array([8, 7, 5, 3], dtype=jnp.int32)

    hidden, cell = encoder_forward_jit(src, src_len, embedding, layer_params)
    hidden, cell = jax.block_until_ready((hidden, cell))

    h_ref, c_ref = encoder_reference(src, src_len, embedding, layer_params)
    np.testing.assert_allclose(np.asarray(hidden), np.asarray(h_ref), atol=5e-5, rtol=5e-5)
    np.testing.assert_allclose(np.asarray(cell), np.asarray(c_ref), atol=5e-5, rtol=5e-5)

    assert hidden.shape == (N_LAYERS, B, HID_DIM)
    assert cell.shape == (N_LAYERS, B, HID_DIM)
    print("KERNEL_OK")
</pallas_src>

<mosaic_0001>
module attributes {stable_mosaic.version = 11 : i64} {
  func.func @encoder_lstm_kernel(%arg0: i32, %arg1: memref<64x128xf32, #tpu.memory_space<vmem>>, %arg2: memref<8x1xi32, #tpu.memory_space<vmem>>, %arg3: memref<1x32x128xf32, #tpu.memory_space<vmem>>, %arg4: memref<1x32x128xf32, #tpu.memory_space<vmem>>, %arg5: memref<1x1x128xf32, #tpu.memory_space<vmem>>, %arg6: memref<1x8x32xf32, #tpu.memory_space<vmem>>, %arg7: memref<1x8x32xf32, #tpu.memory_space<vmem>>, %arg8: memref<64x32xf32, #tpu.memory_space<vmem>>, %arg9: memref<64x128xf32, #tpu.memory_space<vmem>>) attributes {dimension_semantics = [#tpu.dimension_semantics<arbitrary>], iteration_bounds = array<i64: 2>, scalar_prefetch = 0 : i64, scratch_operands = 2 : i64, tpu.core_type = #tpu.core_type<tc>, window_params = [{pipeline_mode = #tpu.pipeline_mode<synchronous>, transform_indices = @transform_0, window_bounds = array<i64: 64, 128>}, {pipeline_mode = #tpu.pipeline_mode<synchronous>, transform_indices = @transform_1, window_bounds = array<i64: 8, 1>}, {transform_indices = @transform_2, window_bounds = array<i64: 1, 32, 128>}, {transform_indices = @transform_3, window_bounds = array<i64: 1, 32, 128>}, {transform_indices = @transform_4, window_bounds = array<i64: 1, 1, 128>}, {transform_indices = @transform_5, window_bounds = array<i64: 1, 8, 32>}, {transform_indices = @transform_6, window_bounds = array<i64: 1, 8, 32>}]} {
    %c0_i32 = arith.constant 0 : i32
    %0 = arith.cmpi eq, %arg0, %c0_i32 : i32
    %1 = arith.extui %0 : i1 to i32
    %c0_i32_0 = arith.constant 0 : i32
    %2 = arith.cmpi ne, %1, %c0_i32_0 : i32
    scf.if %2 {
      %c0_88 = arith.constant 0 : index
      %c0_89 = arith.constant 0 : index
      %409 = vector.load %arg1[%c0_88, %c0_89] : memref<64x128xf32, #tpu.memory_space<vmem>>, vector<64x128xf32>
      %c0_90 = arith.constant 0 : index
      %c0_91 = arith.constant 0 : index
      %410 = vector.load %arg9[%c0_90, %c0_91] : memref<64x128xf32, #tpu.memory_space<vmem>>, vector<64x128xf32>
      tpu.vector_store %arg9[%c0_90, %c0_91], %409 {strides = array<i32>} : memref<64x128xf32, #tpu.memory_space<vmem>>, vector<64x128xf32>,
    } else {
    }
    %c0_i32_1 = arith.constant 0 : i32
    %3 = arith.cmpi sgt, %arg0, %c0_i32_1 : i32
    %4 = arith.extui %3 : i1 to i32
    %c0_i32_2 = arith.constant 0 : i32
    %5 = arith.cmpi ne, %4, %c0_i32_2 : i32
    scf.if %5 {
      %c0_88 = arith.constant 0 : index
      %c0_89 = arith.constant 0 : index
      %409 = vector.load %arg8[%c0_88, %c0_89] : memref<64x32xf32, #tpu.memory_space<vmem>>, vector<64x32xf32>
      %c0_90 = arith.constant 0 : index
      %c0_91 = arith.constant 0 : index
      %c0_92 = arith.constant 0 : index
      %410 = vector.load %arg3[%c0_90, %c0_91, %c0_92] : memref<1x32x128xf32, #tpu.memory_space<vmem>>, vector<1x32x128xf32>
      %411 = vector.shape_cast %410 : vector<1x32x128xf32> to vector<32x128xf32>
      %cst_93 = arith.constant dense<0.000000e+00> : vector<64x128xf32>
      %412 = tpu.matmul %409, %411, %cst_93 {dimension_numbers = #tpu.dot_dimension_numbers<[1], [0], [0], [1], [0, 0, 1, 1], [], []>} : vector<64x32xf32>, vector<32x128xf32>, vector<64x128xf32> -> vector<64x128xf32>
      %c0_94 = arith.constant 0 : index
      %c0_95 = arith.constant 0 : index
      %c0_96 = arith.constant 0 : index
      %413 = vector.load %arg5[%c0_94, %c0_95, %c0_96] : memref<1x1x128xf32, #tpu.memory_space<vmem>>, vector<1x1x128xf32>
      %414 = vector.shape_cast %413 : vector<1x1x128xf32> to vector<1x128xf32>
      %415 = vector.broadcast %414 : vector<1x128xf32> to vector<64x128xf32>
      %416 = arith.addf %412, %415 : vector<64x128xf32>
      %c0_97 = arith.constant 0 : index
      %c0_98 = arith.constant 0 : index
      %417 = vector.load %arg9[%c0_97, %c0_98] : memref<64x128xf32, #tpu.memory_space<vmem>>, vector<64x128xf32>
      tpu.vector_store %arg9[%c0_97, %c0_98], %416 {strides = array<i32>} : memref<64x128xf32, #tpu.memory_space<vmem>>, vector<64x128xf32>,
    } else {
    }
    %c0 = arith.constant 0 : index
    %c0_3 = arith.constant 0 : index
    %c0_4 = arith.constant 0 : index
    %6 = vector.load %arg4[%c0, %c0_3, %c0_4] : memref<1x32x128xf32, #tpu.memory_space<vmem>>, vector<1x32x128xf32>
    %7 = vector.shape_cast %6 : vector<1x32x128xf32> to vector<32x128xf32>
    %c0_5 = arith.constant 0 : index
    %c0_6 = arith.constant 0 : index
    %8 = vector.load %arg2[%c0_5, %c0_6] : memref<8x1xi32, #tpu.memory_space<vmem>>, vector<8x1xi32>
    %cst = arith.constant 0.000000e+00 : f32
    %9 = vector.broadcast %cst : f32 to vector<8x32xf32>
    %cst_7 = arith.constant 0.000000e+00 : f32
    %10 = vector.broadcast %cst_7 : f32 to vector<8x32xf32>
    %cst_8 = arith.constant dense<0.000000e+00> : vector<8x128xf32>
    %11 = tpu.matmul %9, %7, %cst_8 {dimension_numbers = #tpu.dot_dimension_numbers<[1], [0], [0], [1], [0, 0, 1, 1], [], []>} : vector<8x32xf32>, vector<32x128xf32>, vector<8x128xf32> -> vector<8x128xf32>
    %c0_9 = arith.constant 0 : index
    %c0_10 = arith.constant 0 : index
    %12 = vector.load %arg9[%c0_9, %c0_10] : memref<64x128xf32, #tpu.memory_space<vmem>>, vector<8x128xf32>
    %13 = arith.addf %11, %12 : vector<8x128xf32>
    %14 = vector.extract_strided_slice %13 {offsets = [0, 0], sizes = [8, 32], strides = [1, 1]} : vector<8x128xf32> to vector<8x32xf32>
    %15 = arith.negf %14 : vector<8x32xf32>
    %16 = math.exp %15 : vector<8x32xf32>
    %cst_11 = arith.constant 1.000000e+00 : f32
    %17 = vector.broadcast %cst_11 : f32 to vector<8x32xf32>
    %18 = arith.addf %17, %16 : vector<8x32xf32>
    %19 = arith.divf %17, %18 : vector<8x32xf32>
    %20 = vector.extract_strided_slice %13 {offsets = [0, 32], sizes = [8, 32], strides = [1, 1]} : vector<8x128xf32> to vector<8x32xf32>
    %21 = arith.negf %20 : vector<8x32xf32>
    %22 = math.exp %21 : vector<8x32xf32>
    %cst_12 = arith.constant 1.000000e+00 : f32
    %23 = vector.broadcast %cst_12 : f32 to vector<8x32xf32>
    %24 = arith.addf %23, %22 : vector<8x32xf32>
    %25 = arith.divf %23, %24 : vector<8x32xf32>
    %26 = vector.extract_strided_slice %13 {offsets = [0, 64], sizes = [8, 32], strides = [1, 1]} : vector<8x128xf32> to vector<8x32xf32>
    %27 = math.tanh %26 : vector<8x32xf32>
    %28 = vector.extract_strided_slice %13 {offsets = [0, 96], sizes = [8, 32], strides = [1, 1]} : vector<8x128xf32> to vector<8x32xf32>
    %29 = arith.negf %28 : vector<8x32xf32>
    %30 = math.exp %29 : vector<8x32xf32>
    %cst_13 = arith.constant 1.000000e+00 : f32
    %31 = vector.broadcast %cst_13 : f32 to vector<8x32xf32>
    %32 = arith.addf %31, %30 : vector<8x32xf32>
    %33 = arith.divf %31, %32 : vector<8x32xf32>
    %34 = arith.mulf %25, %10 : vector<8x32xf32>
    %35 = arith.mulf %19, %27 : vector<8x32xf32>
    %36 = arith.addf %34, %35 : vector<8x32xf32>
    %37 = math.tanh %36 : vector<8x32xf32>
    %38 = arith.mulf %33, %37 : vector<8x32xf32>
    %c0_i32_14 = arith.constant 0 : i32
    %39 = vector.broadcast %c0_i32_14 : i32 to vector<8x1xi32>
    %40 = arith.cmpi sgt, %8, %39 : vector<8x1xi32>
    %41 = arith.extui %40 : vector<8x1xi1> to vector<8x1xi32>
    %42 = arith.sitofp %41 : vector<8x1xi32> to vector<8x1xf32>
    %43 = vector.broadcast %42 : vector<8x1xf32> to vector<8x32xf32>
    %44 = arith.mulf %43, %38 : vector<8x32xf32>
    %cst_15 = arith.constant 1.000000e+00 : f32
    %45 = vector.broadcast %cst_15 : f32 to vector<8x1xf32>
    %46 = arith.subf %45, %42 : vector<8x1xf32>
    %47 = vector.broadcast %46 : vector<8x1xf32> to vector<8x32xf32>
    %48 = arith.mulf %47, %9 : vector<8x32xf32>
    %49 = arith.addf %44, %48 : vector<8x32xf32>
    %50 = vector.broadcast %42 : vector<8x1xf32> to vector<8x32xf32>
    %51 = arith.mulf %50, %36 : vector<8x32xf32>
    %cst_16 = arith.constant 1.000000e+00 : f32
    %52 = vector.broadcast %cst_16 : f32 to vector<8x1xf32>
    %53 = arith.subf %52, %42 : vector<8x1xf32>
    %54 = vector.broadcast %53 : vector<8x1xf32> to vector<8x32xf32>
    %55 = arith.mulf %54, %10 : vector<8x32xf32>
    %56 = arith.addf %51, %55 : vector<8x32xf32>
    %57 = vector.broadcast %42 : vector<8x1xf32> to vector<8x32xf32>
    %58 = arith.mulf %57, %38 : vector<8x32xf32>
    %c0_17 = arith.constant 0 : index
    %c0_18 = arith.constant 0 : index
    %59 = vector.load %arg8[%c0_17, %c0_18] : memref<64x32xf32, #tpu.memory_space<vmem>>, vector<8x32xf32>
    tpu.vector_store %arg8[%c0_17, %c0_18], %58 {strides = array<i32>} : memref<64x32xf32, #tpu.memory_space<vmem>>, vector<8x32xf32>,
    %cst_19 = arith.constant dense<0.000000e+00> : vector<8x128xf32>
    %60 = tpu.matmul %49, %7, %cst_19 {dimension_numbers = #tpu.dot_dimension_numbers<[1], [0], [0], [1], [0, 0, 1, 1], [], []>} : vector<8x32xf32>, vector<32x128xf32>, vector<8x128xf32> -> vector<8x128xf32>
    %c8 = arith.constant 8 : index
    %c0_20 = arith.constant 0 : index
    %61 = vector.load %arg9[%c8, %c0_20] : memref<64x128xf32, #tpu.memory_space<vmem>>, vector<8x128xf32>
    %62 = arith.addf %60, %61 : vector<8x128xf32>
    %63 = vector.extract_strided_slice %62 {offsets = [0, 0], sizes = [8, 32], strides = [1, 1]} : vector<8x128xf32> to vector<8x32xf32>
    %64 = arith.negf %63 : vector<8x32xf32>
    %65 = math.exp %64 : vector<8x32xf32>
    %cst_21 = arith.constant 1.000000e+00 : f32
    %66 = vector.broadcast %cst_21 : f32 to vector<8x32xf32>
    %67 = arith.addf %66, %65 : vector<8x32xf32>
    %68 = arith.divf %66, %67 : vector<8x32xf32>
    %69 = vector.extract_strided_slice %62 {offsets = [0, 32], sizes = [8, 32], strides = [1, 1]} : vector<8x128xf32> to vector<8x32xf32>
    %70 = arith.negf %69 : vector<8x32xf32>
    %71 = math.exp %70 : vector<8x32xf32>
    %cst_22 = arith.constant 1.000000e+00 : f32
    %72 = vector.broadcast %cst_22 : f32 to vector<8x32xf32>
    %73 = arith.addf %72, %71 : vector<8x32xf32>
    %74 = arith.divf %72, %73 : vector<8x32xf32>
    %75 = vector.extract_strided_slice %62 {offsets = [0, 64], sizes = [8, 32], strides = [1, 1]} : vector<8x128xf32> to vector<8x32xf32>
    %76 = math.tanh %75 : vector<8x32xf32>
    %77 = vector.extract_strided_slice %62 {offsets = [0, 96], sizes = [8, 32], strides = [1, 1]} : vector<8x128xf32> to vector<8x32xf32>
    %78 = arith.negf %77 : vector<8x32xf32>
    %79 = math.exp %78 : vector<8x32xf32>
    %cst_23 = arith.constant 1.000000e+00 : f32
    %80 = vector.broadcast %cst_23 : f32 to vector<8x32xf32>
    %81 = arith.addf %80, %79 : vector<8x32xf32>
    %82 = arith.divf %80, %81 : vector<8x32xf32>
    %83 = arith.mulf %74, %56 : vector<8x32xf32>
    %84 = arith.mulf %68, %76 : vector<8x32xf32>
    %85 = arith.addf %83, %84 : vector<8x32xf32>
    %86 = math.tanh %85 : vector<8x32xf32>
    %87 = arith.mulf %82, %86 : vector<8x32xf32>
    %c1_i32 = arith.constant 1 : i32
    %88 = vector.broadcast %c1_i32 : i32 to vector<8x1xi32>
    %89 = arith.cmpi sgt, %8, %88 : vector<8x1xi32>
    %90 = arith.extui %89 : vector<8x1xi1> to vector<8x1xi32>
    %91 = arith.sitofp %90 : vector<8x1xi32> to vector<8x1xf32>
    %92 = vector.broadcast %91 : vector<8x1xf32> to vector<8x32xf32>
    %93 = arith.mulf %92, %87 : vector<8x32xf32>
    %cst_24 = arith.constant 1.000000e+00 : f32
    %94 = vector.broadcast %cst_24 : f32 to vector<8x1xf32>
    %95 = arith.subf %94, %91 : vector<8x1xf32>
    %96 = vector.broadcast %95 : vector<8x1xf32> to vector<8x32xf32>
    %97 = arith.mulf %96, %49 : vector<8x32xf32>
    %98 = arith.addf %93, %97 : vector<8x32xf32>
    %99 = vector.broadcast %91 : vector<8x1xf32> to vector<8x32xf32>
    %100 = arith.mulf %99, %85 : vector<8x32xf32>
    %cst_25 = arith.constant 1.000000e+00 : f32
    %101 = vector.broadcast %cst_25 : f32 to vector<8x1xf32>
    %102 = arith.subf %101, %91 : vector<8x1xf32>
    %103 = vector.broadcast %102 : vector<8x1xf32> to vector<8x32xf32>
    %104 = arith.mulf %103, %56 : vector<8x32xf32>
    %105 = arith.addf %100, %104 : vector<8x32xf32>
    %106 = vector.broadcast %91 : vector<8x1xf32> to vector<8x32xf32>
    %107 = arith.mulf %106, %87 : vector<8x32xf32>
    %c8_26 = arith.constant 8 : index
    %c0_27 = arith.constant 0 : index
    %108 = vector.load %arg8[%c8_26, %c0_27] : memref<64x32xf32, #tpu.memory_space<vmem>>, vector<8x32xf32>
    tpu.vector_store %arg8[%c8_26, %c0_27], %107 {strides = array<i32>} : memref<64x32xf32, #tpu.memory_space<vmem>>, vector<8x32xf32>,
    %cst_28 = arith.constant dense<0.000000e+00> : vector<8x128xf32>
    %109 = tpu.matmul %98, %7, %cst_28 {dimension_numbers = #tpu.dot_dimension_numbers<[1], [0], [0], [1], [0, 0, 1, 1], [], []>} : vector<8x32xf32>, vector<32x128xf32>, vector<8x128xf32> -> vector<8x128xf32>
    %c16 = arith.constant 16 : index
    %c0_29 = arith.constant 0 : index
    %110 = vector.load %arg9[%c16, %c0_29] : memref<64x128xf32, #tpu.memory_space<vmem>>, vector<8x128xf32>
    %111 = arith.addf %109, %110 : vector<8x128xf32>
    %112 = vector.extract_strided_slice %111 {offsets = [0, 0], sizes = [8, 32], strides = [1, 1]} : vector<8x128xf32> to vector<8x32xf32>
    %113 = arith.negf %112 : vector<8x32xf32>
    %114 = math.exp %113 : vector<8x32xf32>
    %cst_30 = arith.constant 1.000000e+00 : f32
    %115 = vector.broadcast %cst_30 : f32 to vector<8x32xf32>
    %116 = arith.addf %115, %114 : vector<8x32xf32>
    %117 = arith.divf %115, %116 : vector<8x32xf32>
    %118 = vector.extract_strided_slice %111 {offsets = [0, 32], sizes = [8, 32], strides = [1, 1]} : vector<8x128xf32> to vector<8x32xf32>
    %119 = arith.negf %118 : vector<8x32xf32>
    %120 = math.exp %119 : vector<8x32xf32>
    %cst_31 = arith.constant 1.000000e+00 : f32
    %121 = vector.broadcast %cst_31 : f32 to vector<8x32xf32>
    %122 = arith.addf %121, %120 : vector<8x32xf32>
    %123 = arith.divf %121, %122 : vector<8x32xf32>
    %124 = vector.extract_strided_slice %111 {offsets = [0, 64], sizes = [8, 32], strides = [1, 1]} : vector<8x128xf32> to vector<8x32xf32>
    %125 = math.tanh %124 : vector<8x32xf32>
    %126 = vector.extract_strided_slice %111 {offsets = [0, 96], sizes = [8, 32], strides = [1, 1]} : vector<8x128xf32> to vector<8x32xf32>
    %127 = arith.negf %126 : vector<8x32xf32>
    %128 = math.exp %127 : vector<8x32xf32>
    %cst_32 = arith.constant 1.000000e+00 : f32
    %129 = vector.broadcast %cst_32 : f32 to vector<8x32xf32>
    %130 = arith.addf %129, %128 : vector<8x32xf32>
    %131 = arith.divf %129, %130 : vector<8x32xf32>
    %132 = arith.mulf %123, %105 : vector<8x32xf32>
    %133 = arith.mulf %117, %125 : vector<8x32xf32>
    %134 = arith.addf %132, %133 : vector<8x32xf32>
    %135 = math.tanh %134 : vector<8x32xf32>
    %136 = arith.mulf %131, %135 : vector<8x32xf32>
    %c2_i32 = arith.constant 2 : i32
    %137 = vector.broadcast %c2_i32 : i32 to vector<8x1xi32>
    %138 = arith.cmpi sgt, %8, %137 : vector<8x1xi32>
    %139 = arith.extui %138 : vector<8x1xi1> to vector<8x1xi32>
    %140 = arith.sitofp %139 : vector<8x1xi32> to vector<8x1xf32>
    %141 = vector.broadcast %140 : vector<8x1xf32> to vector<8x32xf32>
    %142 = arith.mulf %141, %136 : vector<8x32xf32>
    %cst_33 = arith.constant 1.000000e+00 : f32
    %143 = vector.broadcast %cst_33 : f32 to vector<8x1xf32>
    %144 = arith.subf %143, %140 : vector<8x1xf32>
    %145 = vector.broadcast %144 : vector<8x1xf32> to vector<8x32xf32>
    %146 = arith.mulf %145, %98 : vector<8x32xf32>
    %147 = arith.addf %142, %146 : vector<8x32xf32>
    %148 = vector.broadcast %140 : vector<8x1xf32> to vector<8x32xf32>
    %149 = arith.mulf %148, %134 : vector<8x32xf32>
    %cst_34 = arith.constant 1.000000e+00 : f32
    %150 = vector.broadcast %cst_34 : f32 to vector<8x1xf32>
    %151 = arith.subf %150, %140 : vector<8x1xf32>
    %152 = vector.broadcast %151 : vector<8x1xf32> to vector<8x32xf32>
    %153 = arith.mulf %152, %105 : vector<8x32xf32>
    %154 = arith.addf %149, %153 : vector<8x32xf32>
    %155 = vector.broadcast %140 : vector<8x1xf32> to vector<8x32xf32>
    %156 = arith.mulf %155, %136 : vector<8x32xf32>
    %c16_35 = arith.constant 16 : index
    %c0_36 = arith.constant 0 : index
    %157 = vector.load %arg8[%c16_35, %c0_36] : memref<64x32xf32, #tpu.memory_space<vmem>>, vector<8x32xf32>
    tpu.vector_store %arg8[%c16_35, %c0_36], %156 {strides = array<i32>} : memref<64x32xf32, #tpu.memory_space<vmem>>, vector<8x32xf32>,
    %cst_37 = arith.constant dense<0.000000e+00> : vector<8x128xf32>
    %158 = tpu.matmul %147, %7, %cst_37 {dimension_numbers = #tpu.dot_dimension_numbers<[1], [0], [0], [1], [0, 0, 1, 1], [], []>} : vector<8x32xf32>, vector<32x128xf32>, vector<8x128xf32> -> vector<8x128xf32>
    %c24 = arith.constant 24 : index
    %c0_38 = arith.constant 0 : index
    %159 = vector.load %arg9[%c24, %c0_38] : memref<64x128xf32, #tpu.memory_space<vmem>>, vector<8x128xf32>
    %160 = arith.addf %158, %159 : vector<8x128xf32>
    %161 = vector.extract_strided_slice %160 {offsets = [0, 0], sizes = [8, 32], strides = [1, 1]} : vector<8x128xf32> to vector<8x32xf32>
    %162 = arith.negf %161 : vector<8x32xf32>
    %163 = math.exp %162 : vector<8x32xf32>
    %cst_39 = arith.constant 1.000000e+00 : f32
    %164 = vector.broadcast %cst_39 : f32 to vector<8x32xf32>
    %165 = arith.addf %164, %163 : vector<8x32xf32>
    %166 = arith.divf %164, %165 : vector<8x32xf32>
    %167 = vector.extract_strided_slice %160 {offsets = [0, 32], sizes = [8, 32], strides = [1, 1]} : vector<8x128xf32> to vector<8x32xf32>
    %168 = arith.negf %167 : vector<8x32xf32>
    %169 = math.exp %168 : vector<8x32xf32>
    %cst_40 = arith.constant 1.000000e+00 : f32
    %170 = vector.broadcast %cst_40 : f32 to vector<8x32xf32>
    %171 = arith.addf %170, %169 : vector<8x32xf32>
    %172 = arith.divf %170, %171 : vector<8x32xf32>
    %173 = vector.extract_strided_slice %160 {offsets = [0, 64], sizes = [8, 32], strides = [1, 1]} : vector<8x128xf32> to vector<8x32xf32>
    %174 = math.tanh %173 : vector<8x32xf32>
    %175 = vector.extract_strided_slice %160 {offsets = [0, 96], sizes = [8, 32], strides = [1, 1]} : vector<8x128xf32> to vector<8x32xf32>
    %176 = arith.negf %175 : vector<8x32xf32>
    %177 = math.exp %176 : vector<8x32xf32>
    %cst_41 = arith.constant 1.000000e+00 : f32
    %178 = vector.broadcast %cst_41 : f32 to vector<8x32xf32>
    %179 = arith.addf %178, %177 : vector<8x32xf32>
    %180 = arith.divf %178, %179 : vector<8x32xf32>
    %181 = arith.mulf %172, %154 : vector<8x32xf32>
    %182 = arith.mulf %166, %174 : vector<8x32xf32>
    %183 = arith.addf %181, %182 : vector<8x32xf32>
    %184 = math.tanh %183 : vector<8x32xf32>
    %185 = arith.mulf %180, %184 : vector<8x32xf32>
    %c3_i32 = arith.constant 3 : i32
    %186 = vector.broadcast %c3_i32 : i32 to vector<8x1xi32>
    %187 = arith.cmpi sgt, %8, %186 : vector<8x1xi32>
    %188 = arith.extui %187 : vector<8x1xi1> to vector<8x1xi32>
    %189 = arith.sitofp %188 : vector<8x1xi32> to vector<8x1xf32>
    %190 = vector.broadcast %189 : vector<8x1xf32> to vector<8x32xf32>
    %191 = arith.mulf %190, %185 : vector<8x32xf32>
    %cst_42 = arith.constant 1.000000e+00 : f32
    %192 = vector.broadcast %cst_42 : f32 to vector<8x1xf32>
    %193 = arith.subf %192, %189 : vector<8x1xf32>
    %194 = vector.broadcast %193 : vector<8x1xf32> to vector<8x32xf32>
    %195 = arith.mulf %194, %147 : vector<8x32xf32>
    %196 = arith.addf %191, %195 : vector<8x32xf32>
    %197 = vector.broadcast %189 : vector<8x1xf32> to vector<8x32xf32>
    %198 = arith.mulf %197, %183 : vector<8x32xf32>
    %cst_43 = arith.constant 1.000000e+00 : f32
    %199 = vector.broadcast %cst_43 : f32 to vector<8x1xf32>
    %200 = arith.subf %199, %189 : vector<8x1xf32>
    %201 = vector.broadcast %200 : vector<8x1xf32> to vector<8x32xf32>
    %202 = arith.mulf %201, %154 : vector<8x32xf32>
    %203 = arith.addf %198, %202 : vector<8x32xf32>
    %204 = vector.broadcast %189 : vector<8x1xf32> to vector<8x32xf32>
    %205 = arith.mulf %204, %185 : vector<8x32xf32>
    %c24_44 = arith.constant 24 : index
    %c0_45 = arith.constant 0 : index
    %206 = vector.load %arg8[%c24_44, %c0_45] : memref<64x32xf32, #tpu.memory_space<vmem>>, vector<8x32xf32>
    tpu.vector_store %arg8[%c24_44, %c0_45], %205 {strides = array<i32>} : memref<64x32xf32, #tpu.memory_space<vmem>>, vector<8x32xf32>,
    %cst_46 = arith.constant dense<0.000000e+00> : vector<8x128xf32>
    %207 = tpu.matmul %196, %7, %cst_46 {dimension_numbers = #tpu.dot_dimension_numbers<[1], [0], [0], [1], [0, 0, 1, 1], [], []>} : vector<8x32xf32>, vector<32x128xf32>, vector<8x128xf32> -> vector<8x128xf32>
    %c32 = arith.constant 32 : index
    %c0_47 = arith.constant 0 : index
    %208 = vector.load %arg9[%c32, %c0_47] : memref<64x128xf32, #tpu.memory_space<vmem>>, vector<8x128xf32>
    %209 = arith.addf %207, %208 : vector<8x128xf32>
    %210 = vector.extract_strided_slice %209 {offsets = [0, 0], sizes = [8, 32], strides = [1, 1]} : vector<8x128xf32> to vector<8x32xf32>
    %211 = arith.negf %210 : vector<8x32xf32>
    %212 = math.exp %211 : vector<8x32xf32>
    %cst_48 = arith.constant 1.000000e+00 : f32
    %213 = vector.broadcast %cst_48 : f32 to vector<8x32xf32>
    %214 = arith.addf %213, %212 : vector<8x32xf32>
    %215 = arith.divf %213, %214 : vector<8x32xf32>
    %216 = vector.extract_strided_slice %209 {offsets = [0, 32], sizes = [8, 32], strides = [1, 1]} : vector<8x128xf32> to vector<8x32xf32>
    %217 = arith.negf %216 : vector<8x32xf32>
    %218 = math.exp %217 : vector<8x32xf32>
    %cst_49 = arith.constant 1.000000e+00 : f32
    %219 = vector.broadcast %cst_49 : f32 to vector<8x32xf32>
    %220 = arith.addf %219, %218 : vector<8x32xf32>
    %221 = arith.divf %219, %220 : vector<8x32xf32>
    %222 = vector.extract_strided_slice %209 {offsets = [0, 64], sizes = [8, 32], strides = [1, 1]} : vector<8x128xf32> to vector<8x32xf32>
    %223 = math.tanh %222 : vector<8x32xf32>
    %224 = vector.extract_strided_slice %209 {offsets = [0, 96], sizes = [8, 32], strides = [1, 1]} : vector<8x128xf32> to vector<8x32xf32>
    %225 = arith.negf %224 : vector<8x32xf32>
    %226 = math.exp %225 : vector<8x32xf32>
    %cst_50 = arith.constant 1.000000e+00 : f32
    %227 = vector.broadcast %cst_50 : f32 to vector<8x32xf32>
    %228 = arith.addf %227, %226 : vector<8x32xf32>
    %229 = arith.divf %227, %228 : vector<8x32xf32>
    %230 = arith.mulf %221, %203 : vector<8x32xf32>
    %231 = arith.mulf %215, %223 : vector<8x32xf32>
    %232 = arith.addf %230, %231 : vector<8x32xf32>
    %233 = math.tanh %232 : vector<8x32xf32>
    %234 = arith.mulf %229, %233 : vector<8x32xf32>
    %c4_i32 = arith.constant 4 : i32
    %235 = vector.broadcast %c4_i32 : i32 to vector<8x1xi32>
    %236 = arith.cmpi sgt, %8, %235 : vector<8x1xi32>
    %237 = arith.extui %236 : vector<8x1xi1> to vector<8x1xi32>
    %238 = arith.sitofp %237 : vector<8x1xi32> to vector<8x1xf32>
    %239 = vector.broadcast %238 : vector<8x1xf32> to vector<8x32xf32>
    %240 = arith.mulf %239, %234 : vector<8x32xf32>
    %cst_51 = arith.constant 1.000000e+00 : f32
    %241 = vector.broadcast %cst_51 : f32 to vector<8x1xf32>
    %242 = arith.subf %241, %238 : vector<8x1xf32>
    %243 = vector.broadcast %242 : vector<8x1xf32> to vector<8x32xf32>
    %244 = arith.mulf %243, %196 : vector<8x32xf32>
    %245 = arith.addf %240, %244 : vector<8x32xf32>
    %246 = vector.broadcast %238 : vector<8x1xf32> to vector<8x32xf32>
    %247 = arith.mulf %246, %232 : vector<8x32xf32>
    %cst_52 = arith.constant 1.000000e+00 : f32
    %248 = vector.broadcast %cst_52 : f32 to vector<8x1xf32>
    %249 = arith.subf %248, %238 : vector<8x1xf32>
    %250 = vector.broadcast %249 : vector<8x1xf32> to vector<8x32xf32>
    %251 = arith.mulf %250, %203 : vector<8x32xf32>
    %252 = arith.addf %247, %251 : vector<8x32xf32>
    %253 = vector.broadcast %238 : vector<8x1xf32> to vector<8x32xf32>
    %254 = arith.mulf %253, %234 : vector<8x32xf32>
    %c32_53 = arith.constant 32 : index
    %c0_54 = arith.constant 0 : index
    %255 = vector.load %arg8[%c32_53, %c0_54] : memref<64x32xf32, #tpu.memory_space<vmem>>, vector<8x32xf32>
    tpu.vector_store %arg8[%c32_53, %c0_54], %254 {strides = array<i32>} : memref<64x32xf32, #tpu.memory_space<vmem>>, vector<8x32xf32>,
    %cst_55 = arith.constant dense<0.000000e+00> : vector<8x128xf32>
    %256 = tpu.matmul %245, %7, %cst_55 {dimension_numbers = #tpu.dot_dimension_numbers<[1], [0], [0], [1], [0, 0, 1, 1], [], []>} : vector<8x32xf32>, vector<32x128xf32>, vector<8x128xf32> -> vector<8x128xf32>
    %c40 = arith.constant 40 : index
    %c0_56 = arith.constant 0 : index
    %257 = vector.load %arg9[%c40, %c0_56] : memref<64x128xf32, #tpu.memory_space<vmem>>, vector<8x128xf32>
    %258 = arith.addf %256, %257 : vector<8x128xf32>
    %259 = vector.extract_strided_slice %258 {offsets = [0, 0], sizes = [8, 32], strides = [1, 1]} : vector<8x128xf32> to vector<8x32xf32>
    %260 = arith.negf %259 : vector<8x32xf32>
    %261 = math.exp %260 : vector<8x32xf32>
    %cst_57 = arith.constant 1.000000e+00 : f32
    %262 = vector.broadcast %cst_57 : f32 to vector<8x32xf32>
    %263 = arith.addf %262, %261 : vector<8x32xf32>
    %264 = arith.divf %262, %263 : vector<8x32xf32>
    %265 = vector.extract_strided_slice %258 {offsets = [0, 32], sizes = [8, 32], strides = [1, 1]} : vector<8x128xf32> to vector<8x32xf32>
    %266 = arith.negf %265 : vector<8x32xf32>
    %267 = math.exp %266 : vector<8x32xf32>
    %cst_58 = arith.constant 1.000000e+00 : f32
    %268 = vector.broadcast %cst_58 : f32 to vector<8x32xf32>
    %269 = arith.addf %268, %267 : vector<8x32xf32>
    %270 = arith.divf %268, %269 : vector<8x32xf32>
    %271 = vector.extract_strided_slice %258 {offsets = [0, 64], sizes = [8, 32], strides = [1, 1]} : vector<8x128xf32> to vector<8x32xf32>
    %272 = math.tanh %271 : vector<8x32xf32>
    %273 = vector.extract_strided_slice %258 {offsets = [0, 96], sizes = [8, 32], strides = [1, 1]} : vector<8x128xf32> to vector<8x32xf32>
    %274 = arith.negf %273 : vector<8x32xf32>
    %275 = math.exp %274 : vector<8x32xf32>
    %cst_59 = arith.constant 1.000000e+00 : f32
    %276 = vector.broadcast %cst_59 : f32 to vector<8x32xf32>
    %277 = arith.addf %276, %275 : vector<8x32xf32>
    %278 = arith.divf %276, %277 : vector<8x32xf32>
    %279 = arith.mulf %270, %252 : vector<8x32xf32>
    %280 = arith.mulf %264, %272 : vector<8x32xf32>
    %281 = arith.addf %279, %280 : vector<8x32xf32>
    %282 = math.tanh %281 : vector<8x32xf32>
    %283 = arith.mulf %278, %282 : vector<8x32xf32>
    %c5_i32 = arith.constant 5 : i32
    %284 = vector.broadcast %c5_i32 : i32 to vector<8x1xi32>
    %285 = arith.cmpi sgt, %8, %284 : vector<8x1xi32>
    %286 = arith.extui %285 : vector<8x1xi1> to vector<8x1xi32>
    %287 = arith.sitofp %286 : vector<8x1xi32> to vector<8x1xf32>
    %288 = vector.broadcast %287 : vector<8x1xf32> to vector<8x32xf32>
    %289 = arith.mulf %288, %283 : vector<8x32xf32>
    %cst_60 = arith.constant 1.000000e+00 : f32
    %290 = vector.broadcast %cst_60 : f32 to vector<8x1xf32>
    %291 = arith.subf %290, %287 : vector<8x1xf32>
    %292 = vector.broadcast %291 : vector<8x1xf32> to vector<8x32xf32>
    %293 = arith.mulf %292, %245 : vector<8x32xf32>
    %294 = arith.addf %289, %293 : vector<8x32xf32>
    %295 = vector.broadcast %287 : vector<8x1xf32> to vector<8x32xf32>
    %296 = arith.mulf %295, %281 : vector<8x32xf32>
    %cst_61 = arith.constant 1.000000e+00 : f32
    %297 = vector.broadcast %cst_61 : f32 to vector<8x1xf32>
    %298 = arith.subf %297, %287 : vector<8x1xf32>
    %299 = vector.broadcast %298 : vector<8x1xf32> to vector<8x32xf32>
    %300 = arith.mulf %299, %252 : vector<8x32xf32>
    %301 = arith.addf %296, %300 : vector<8x32xf32>
    %302 = vector.broadcast %287 : vector<8x1xf32> to vector<8x32xf32>
    %303 = arith.mulf %302, %283 : vector<8x32xf32>
    %c40_62 = arith.constant 40 : index
    %c0_63 = arith.constant 0 : index
    %304 = vector.load %arg8[%c40_62, %c0_63] : memref<64x32xf32, #tpu.memory_space<vmem>>, vector<8x32xf32>
    tpu.vector_store %arg8[%c40_62, %c0_63], %303 {strides = array<i32>} : memref<64x32xf32, #tpu.memory_space<vmem>>, vector<8x32xf32>,
    %cst_64 = arith.constant dense<0.000000e+00> : vector<8x128xf32>
    %305 = tpu.matmul %294, %7, %cst_64 {dimension_numbers = #tpu.dot_dimension_numbers<[1], [0], [0], [1], [0, 0, 1, 1], [], []>} : vector<8x32xf32>, vector<32x128xf32>, vector<8x128xf32> -> vector<8x128xf32>
    %c48 = arith.constant 48 : index
    %c0_65 = arith.constant 0 : index
    %306 = vector.load %arg9[%c48, %c0_65] : memref<64x128xf32, #tpu.memory_space<vmem>>, vector<8x128xf32>
    %307 = arith.addf %305, %306 : vector<8x128xf32>
    %308 = vector.extract_strided_slice %307 {offsets = [0, 0], sizes = [8, 32], strides = [1, 1]} : vector<8x128xf32> to vector<8x32xf32>
    %309 = arith.negf %308 : vector<8x32xf32>
    %310 = math.exp %309 : vector<8x32xf32>
    %cst_66 = arith.constant 1.000000e+00 : f32
    %311 = vector.broadcast %cst_66 : f32 to vector<8x32xf32>
    %312 = arith.addf %311, %310 : vector<8x32xf32>
    %313 = arith.divf %311, %312 : vector<8x32xf32>
    %314 = vector.extract_strided_slice %307 {offsets = [0, 32], sizes = [8, 32], strides = [1, 1]} : vector<8x128xf32> to vector<8x32xf32>
    %315 = arith.negf %314 : vector<8x32xf32>
    %316 = math.exp %315 : vector<8x32xf32>
    %cst_67 = arith.constant 1.000000e+00 : f32
    %317 = vector.broadcast %cst_67 : f32 to vector<8x32xf32>
    %318 = arith.addf %317, %316 : vector<8x32xf32>
    %319 = arith.divf %317, %318 : vector<8x32xf32>
    %320 = vector.extract_strided_slice %307 {offsets = [0, 64], sizes = [8, 32], strides = [1, 1]} : vector<8x128xf32> to vector<8x32xf32>
    %321 = math.tanh %320 : vector<8x32xf32>
    %322 = vector.extract_strided_slice %307 {offsets = [0, 96], sizes = [8, 32], strides = [1, 1]} : vector<8x128xf32> to vector<8x32xf32>
    %323 = arith.negf %322 : vector<8x32xf32>
    %324 = math.exp %323 : vector<8x32xf32>
    %cst_68 = arith.constant 1.000000e+00 : f32
    %325 = vector.broadcast %cst_68 : f32 to vector<8x32xf32>
    %326 = arith.addf %325, %324 : vector<8x32xf32>
    %327 = arith.divf %325, %326 : vector<8x32xf32>
    %328 = arith.mulf %319, %301 : vector<8x32xf32>
    %329 = arith.mulf %313, %321 : vector<8x32xf32>
    %330 = arith.addf %328, %329 : vector<8x32xf32>
    %331 = math.tanh %330 : vector<8x32xf32>
    %332 = arith.mulf %327, %331 : vector<8x32xf32>
    %c6_i32 = arith.constant 6 : i32
    %333 = vector.broadcast %c6_i32 : i32 to vector<8x1xi32>
    %334 = arith.cmpi sgt, %8, %333 : vector<8x1xi32>
    %335 = arith.extui %334 : vector<8x1xi1> to vector<8x1xi32>
    %336 = arith.sitofp %335 : vector<8x1xi32> to vector<8x1xf32>
    %337 = vector.broadcast %336 : vector<8x1xf32> to vector<8x32xf32>
    %338 = arith.mulf %337, %332 : vector<8x32xf32>
    %cst_69 = arith.constant 1.000000e+00 : f32
    %339 = vector.broadcast %cst_69 : f32 to vector<8x1xf32>
    %340 = arith.subf %339, %336 : vector<8x1xf32>
    %341 = vector.broadcast %340 : vector<8x1xf32> to vector<8x32xf32>
    %342 = arith.mulf %341, %294 : vector<8x32xf32>
    %343 = arith.addf %338, %342 : vector<8x32xf32>
    %344 = vector.broadcast %336 : vector<8x1xf32> to vector<8x32xf32>
    %345 = arith.mulf %344, %330 : vector<8x32xf32>
    %cst_70 = arith.constant 1.000000e+00 : f32
    %346 = vector.broadcast %cst_70 : f32 to vector<8x1xf32>
    %347 = arith.subf %346, %336 : vector<8x1xf32>
    %348 = vector.broadcast %347 : vector<8x1xf32> to vector<8x32xf32>
    %349 = arith.mulf %348, %301 : vector<8x32xf32>
    %350 = arith.addf %345, %349 : vector<8x32xf32>
    %351 = vector.broadcast %336 : vector<8x1xf32> to vector<8x32xf32>
    %352 = arith.mulf %351, %332 : vector<8x32xf32>
    %c48_71 = arith.constant 48 : index
    %c0_72 = arith.constant 0 : index
    %353 = vector.load %arg8[%c48_71, %c0_72] : memref<64x32xf32, #tpu.memory_space<vmem>>, vector<8x32xf32>
    tpu.vector_store %arg8[%c48_71, %c0_72], %352 {strides = array<i32>} : memref<64x32xf32, #tpu.memory_space<vmem>>, vector<8x32xf32>,
    %cst_73 = arith.constant dense<0.000000e+00> : vector<8x128xf32>
    %354 = tpu.matmul %343, %7, %cst_73 {dimension_numbers = #tpu.dot_dimension_numbers<[1], [0], [0], [1], [0, 0, 1, 1], [], []>} : vector<8x32xf32>, vector<32x128xf32>, vector<8x128xf32> -> vector<8x128xf32>
    %c56 = arith.constant 56 : index
    %c0_74 = arith.constant 0 : index
    %355 = vector.load %arg9[%c56, %c0_74] : memref<64x128xf32, #tpu.memory_space<vmem>>, vector<8x128xf32>
    %356 = arith.addf %354, %355 : vector<8x128xf32>
    %357 = vector.extract_strided_slice %356 {offsets = [0, 0], sizes = [8, 32], strides = [1, 1]} : vector<8x128xf32> to vector<8x32xf32>
    %358 = arith.negf %357 : vector<8x32xf32>
    %359 = math.exp %358 : vector<8x32xf32>
    %cst_75 = arith.constant 1.000000e+00 : f32
    %360 = vector.broadcast %cst_75 : f32 to vector<8x32xf32>
    %361 = arith.addf %360, %359 : vector<8x32xf32>
    %362 = arith.divf %360, %361 : vector<8x32xf32>
    %363 = vector.extract_strided_slice %356 {offsets = [0, 32], sizes = [8, 32], strides = [1, 1]} : vector<8x128xf32> to vector<8x32xf32>
    %364 = arith.negf %363 : vector<8x32xf32>
    %365 = math.exp %364 : vector<8x32xf32>
    %cst_76 = arith.constant 1.000000e+00 : f32
    %366 = vector.broadcast %cst_76 : f32 to vector<8x32xf32>
    %367 = arith.addf %366, %365 : vector<8x32xf32>
    %368 = arith.divf %366, %367 : vector<8x32xf32>
    %369 = vector.extract_strided_slice %356 {offsets = [0, 64], sizes = [8, 32], strides = [1, 1]} : vector<8x128xf32> to vector<8x32xf32>
    %370 = math.tanh %369 : vector<8x32xf32>
    %371 = vector.extract_strided_slice %356 {offsets = [0, 96], sizes = [8, 32], strides = [1, 1]} : vector<8x128xf32> to vector<8x32xf32>
    %372 = arith.negf %371 : vector<8x32xf32>
    %373 = math.exp %372 : vector<8x32xf32>
    %cst_77 = arith.constant 1.000000e+00 : f32
    %374 = vector.broadcast %cst_77 : f32 to vector<8x32xf32>
    %375 = arith.addf %374, %373 : vector<8x32xf32>
    %376 = arith.divf %374, %375 : vector<8x32xf32>
    %377 = arith.mulf %368, %350 : vector<8x32xf32>
    %378 = arith.mulf %362, %370 : vector<8x32xf32>
    %379 = arith.addf %377, %378 : vector<8x32xf32>
    %380 = math.tanh %379 : vector<8x32xf32>
    %381 = arith.mulf %376, %380 : vector<8x32xf32>
    %c7_i32 = arith.constant 7 : i32
    %382 = vector.broadcast %c7_i32 : i32 to vector<8x1xi32>
    %383 = arith.cmpi sgt, %8, %382 : vector<8x1xi32>
    %384 = arith.extui %383 : vector<8x1xi1> to vector<8x1xi32>
    %385 = arith.sitofp %384 : vector<8x1xi32> to vector<8x1xf32>
    %386 = vector.broadcast %385 : vector<8x1xf32> to vector<8x32xf32>
    %387 = arith.mulf %386, %381 : vector<8x32xf32>
    %cst_78 = arith.constant 1.000000e+00 : f32
    %388 = vector.broadcast %cst_78 : f32 to vector<8x1xf32>
    %389 = arith.subf %388, %385 : vector<8x1xf32>
    %390 = vector.broadcast %389 : vector<8x1xf32> to vector<8x32xf32>
    %391 = arith.mulf %390, %343 : vector<8x32xf32>
    %392 = arith.addf %387, %391 : vector<8x32xf32>
    %393 = vector.broadcast %385 : vector<8x1xf32> to vector<8x32xf32>
    %394 = arith.mulf %393, %379 : vector<8x32xf32>
    %cst_79 = arith.constant 1.000000e+00 : f32
    %395 = vector.broadcast %cst_79 : f32 to vector<8x1xf32>
    %396 = arith.subf %395, %385 : vector<8x1xf32>
    %397 = vector.broadcast %396 : vector<8x1xf32> to vector<8x32xf32>
    %398 = arith.mulf %397, %350 : vector<8x32xf32>
    %399 = arith.addf %394, %398 : vector<8x32xf32>
    %400 = vector.broadcast %385 : vector<8x1xf32> to vector<8x32xf32>
    %401 = arith.mulf %400, %381 : vector<8x32xf32>
    %c56_80 = arith.constant 56 : index
    %c0_81 = arith.constant 0 : index
    %402 = vector.load %arg8[%c56_80, %c0_81] : memref<64x32xf32, #tpu.memory_space<vmem>>, vector<8x32xf32>
    tpu.vector_store %arg8[%c56_80, %c0_81], %401 {strides = array<i32>} : memref<64x32xf32, #tpu.memory_space<vmem>>, vector<8x32xf32>,
    %c0_82 = arith.constant 0 : index
    %c0_83 = arith.constant 0 : index
    %c0_84 = arith.constant 0 : index
    %403 = vector.load %arg6[%c0_82, %c0_83, %c0_84] : memref<1x8x32xf32, #tpu.memory_space<vmem>>, vector<1x8x32xf32>
    %404 = vector.shape_cast %403 : vector<1x8x32xf32> to vector<8x32xf32>
    %405 = vector.shape_cast %392 : vector<8x32xf32> to vector<1x8x32xf32>
    tpu.vector_store %arg6[%c0_82, %c0_83, %c0_84], %405 {strides = array<i32>} : memref<1x8x32xf32, #tpu.memory_space<vmem>>, vector<1x8x32xf32>,
    %c0_85 = arith.constant 0 : index
    %c0_86 = arith.constant 0 : index
    %c0_87 = arith.constant 0 : index
    %406 = vector.load %arg7[%c0_85, %c0_86, %c0_87] : memref<1x8x32xf32, #tpu.memory_space<vmem>>, vector<1x8x32xf32>
    %407 = vector.shape_cast %406 : vector<1x8x32xf32> to vector<8x32xf32>
    %408 = vector.shape_cast %399 : vector<8x32xf32> to vector<1x8x32xf32>
    tpu.vector_store %arg7[%c0_85, %c0_86, %c0_87], %408 {strides = array<i32>} : memref<1x8x32xf32, #tpu.memory_space<vmem>>, vector<1x8x32xf32>,
    return
  }
  func.func @transform_0(%arg0: i32) -> (i32, i32) {
    %c0_i32 = arith.constant 0 : i32
    %c0_i32_0 = arith.constant 0 : i32
    %c0_i32_1 = arith.constant 0 : i32
    return %c0_i32, %c0_i32_0 : i32, i32
  }
  func.func @transform_1(%arg0: i32) -> (i32, i32) {
    %c0_i32 = arith.constant 0 : i32
    %c0_i32_0 = arith.constant 0 : i32
    %c0_i32_1 = arith.constant 0 : i32
    return %c0_i32, %c0_i32_0 : i32, i32
  }
  func.func @transform_2(%arg0: i32) -> (i32, i32, i32) {
    %c0_i32 = arith.constant 0 : i32
    %c0_i32_0 = arith.constant 0 : i32
    %c0_i32_1 = arith.constant 0 : i32
    return %arg0, %c0_i32, %c0_i32_0 : i32, i32, i32
  }
  func.func @transform_3(%arg0: i32) -> (i32, i32, i32) {
    %c0_i32 = arith.constant 0 : i32
    %c0_i32_0 = arith.constant 0 : i32
    %c0_i32_1 = arith.constant 0 : i32
    return %arg0, %c0_i32, %c0_i32_0 : i32, i32, i32
  }
  func.func @transform_4(%arg0: i32) -> (i32, i32, i32) {
    %c0_i32 = arith.constant 0 : i32
    %c0_i32_0 = arith.constant 0 : i32
    %c0_i32_1 = arith.constant 0 : i32
    return %arg0, %c0_i32, %c0_i32_0 : i32, i32, i32
  }
  func.func @transform_5(%arg0: i32) -> (i32, i32, i32) {
    %c0_i32 = arith.constant 0 : i32
    %c0_i32_0 = arith.constant 0 : i32
    %c0_i32_1 = arith.constant 0 : i32
    return %arg0, %c0_i32, %c0_i32_0 : i32, i32, i32
  }
  func.func @transform_6(%arg0: i32) -> (i32, i32, i32) {
    %c0_i32 = arith.constant 0 : i32
    %c0_i32_0 = arith.constant 0 : i32
    %c0_i32_1 = arith.constant 0 : i32
    return %arg0, %c0_i32, %c0_i32_0 : i32, i32, i32
  }
}

</mosaic_0001>

<bundles_post_ra>
// kernel: encoder_forward.1
= control target key start
LH: loop header
LB: loop body
LE: loop exit
PB: predicated region body
PF: predicated region fallthrough
CT: control target
= control target key end

     0   :  { %s1994_s21 = smov 0   ;;  %s2241_s0 = inlined_call_operand.vmem [shape: f32[64,128], index: 0, kind: input, shape index: {}]   ;;  %s2242_s1 = inlined_call_operand.vmem [shape: s32[8,1], index: 1, kind: input, shape index: {}]   ;;  %s2243_s2 = inlined_call_operand.vmem [shape: f32[2,32,128], index: 2, kind: input, shape index: {}]   ;;  %s2244_s3 = inlined_call_operand.vmem [shape: f32[2,32,128], index: 3, kind: input, shape index: {}]   ;;  %s2245_s4 = inlined_call_operand.vmem [shape: f32[2,1,128], index: 4, kind: input, shape index: {}]   ;;  %s2246_s5 = inlined_call_operand.vmem [shape: f32[2,8,32], index: 5, kind: output, shape index: {0}]   ;;  %s2247_s6 = inlined_call_operand.vmem [shape: f32[2,8,32], index: 6, kind: output, shape index: {1}]  }
   0x1 LB: > { %s2000_s22 = sadd.s32 4294967295, %s1950_s21   ;;  %p1598_p0 = scmp.ge.s32.totalorder %s1950_s21, 1  ;;  %s1950_s21 = sphi %s1994_s21, %s17_s21  }
   0x2   : > { %p233_p1 = scmp.lt.s32.totalorder %s1950_s21, 3 }
   0x4   : > { %p234_p2 = pnand %p1598_p0, %p233_p1 }
   0x5   : > { %p274_p3 = scmp.lt.s32.totalorder (!%p234_p2), %s2000_s22, 1  ;;  %p1605_p4 = scmp.ne.s32.totalorder (!%p234_p2), %s2000_s22, 0 }
   0x6   : > { %237 = sbr.rel (%p234_p2) target bundleno = 5915 (0x171b), region = 40 }
   0xd   : > { %s2006_s23 = scalar_select %p274_p3, %s2000_s22, 1 }
   0xe   : > { %298 = sbr.rel (%p1605_p4) target bundleno = 21 (0x15), region = 44  ;;  %v299_v0 = vld [vmem:[%s2241_s0] sm:$0xff] (!%p1605_p4)  ;;  %v300_v1 = vld [vmem:[%s2241_s0 + $0x8] sm:$0xff] (!%p1605_p4)  ;;  %v301_v2 = vld [vmem:[%s2241_s0 + $0x10] sm:$0xff] (!%p1605_p4) }
   0xf   : > { %s1641_s24 = sshll.u32 %s2006_s23, 5  ;;  %s286_s27 = scalar_lea.vmem %s2245_s4, %s2006_s23  ;;  %307 = vst [vmem:[#allocation3] sm:$0xff] (!%p1605_p4), %v299_v0  ;;  %308 = vst [vmem:[#allocation3 + $0x8] sm:$0xff] (!%p1605_p4), %v300_v1  ;;  %v302_v3 = vld [vmem:[%s2241_s0 + $0x18] sm:$0xff] (!%p1605_p4)  ;;  %v303_v4 = vld [vmem:[%s2241_s0 + $0x20] sm:$0xff] (!%p1605_p4) }
  0x10   : > { %s2016_s30 = scalar_lea.vmem %s2243_s2, %s1641_s24  ;;  %s2021_s9 = scalar_lea.vmem %s2244_s3, %s1641_s24  ;;  %309 = vst [vmem:[#allocation3 + $0x10] sm:$0xff] (!%p1605_p4), %v301_v2  ;;  %v304_v5 = vld [vmem:[%s2241_s0 + $0x28] sm:$0xff] (!%p1605_p4)  ;;  %310 = vst [vmem:[#allocation3 + $0x18] sm:$0xff] (!%p1605_p4), %v302_v3  ;;  %v305_v6 = vld [vmem:[%s2241_s0 + $0x30] sm:$0xff] (!%p1605_p4) }
  0x11   : > { %s1603_s10 = sshll.u32 %s2006_s23, 3  ;;  %311 = vst [vmem:[#allocation3 + $0x20] sm:$0xff] (!%p1605_p4), %v303_v4  ;;  %312 = vst [vmem:[#allocation3 + $0x28] sm:$0xff] (!%p1605_p4), %v304_v5  ;;  %v306_v7 = vld [vmem:[%s2241_s0 + $0x38] sm:$0xff] (!%p1605_p4) }
  0x12   : > { %s2027_s13 = scalar_lea.vmem %s2246_s5, %s1603_s10  ;;  %s2032_s16 = scalar_lea.vmem %s2247_s6, %s1603_s10  ;;  %313 = vst [vmem:[#allocation3 + $0x30] sm:$0xff] (!%p1605_p4), %v305_v6  ;;  %314 = vst [vmem:[#allocation3 + $0x38] sm:$0xff] (!%p1605_p4), %v306_v7 }
  0x15 PF: > { %p1606_p5 = scmp.le.s32.totalorder %s2000_s22, 0 }
  0x16   : > { %v327_v8 = vld [vmem:[%s2016_s30] sm:$0xff] (!%p1606_p5)  ;;  %v328_v9 = vld [vmem:[%s2016_s30 + $0x8] sm:$0xff] (!%p1606_p5)  ;;  %v329_v10 = vld [vmem:[%s2016_s30 + $0x10] sm:$0xff] (!%p1606_p5)  ;;  %vm338_vm0 = vcmask (!%p1606_p5), 261120  }
  0x17   : > { %318 = sbr.rel (%p1606_p5) target bundleno = 254 (0xfe), region = 48  ;;  %v1803_v11 = vpack.c.bf16 (!%p1606_p5), %v328_v9, %v327_v8  ;;  %v330_v12 = vld [vmem:[%s2016_s30 + $0x18] sm:$0xff] (!%p1606_p5)  ;;  %v319_v13 = vld [vmem:[#allocation2] sm:$0xff] (!%p1606_p5)  ;;  %v320_v16 = vld [vmem:[#allocation2 + $0x8] sm:$0xff] (!%p1606_p5) }
  0x18   : > { %v323_v14 = vld [vmem:[#allocation2 + $0x20] sm:$0xff] (!%p1606_p5)  ;;  %v1807_v15 = vpack.c.bf16 (!%p1606_p5), %v330_v12, %v329_v10  ;;  %1703 = vmatprep.mubr.msk.f32.mxu0 (!%p1606_p5), %vm338_vm0, %v319_v13  ;;  %v324_v17 = vld [vmem:[#allocation2 + $0x28] sm:$0xff] (!%p1606_p5)  ;;  %v321_v18 = vld [vmem:[#allocation2 + $0x10] sm:$0xff] (!%p1606_p5) }
  0x19   : > { %1709 = vmatprep.mubr.msk.f32.mxu1 (!%p1606_p5), %vm338_vm0, %v323_v14  ;;  %1804 = vmatprep.subr.bf16.mxu0 (!%p1606_p5), %v1803_v11  ;;  %v325_v19 = vld [vmem:[#allocation2 + $0x30] sm:$0xff] (!%p1606_p5)  ;;  %v322_v20 = vld [vmem:[#allocation2 + $0x18] sm:$0xff] (!%p1606_p5)  ;;  %v1607_v22 = vld [vmem:[%s286_s27] ss:$0 sm:$0xff] (!%p1606_p5) }
  0x1a   : > { %1859 = vmatprep.subr.bf16.mxu1 (!%p1606_p5), %v1803_v11  ;;  %1806 = vmatpush3.bf16.msra.mxu0 (!%p1606_p5), %v1803_v11  ;;  %v326_v21 = vld [vmem:[#allocation2 + $0x38] sm:$0xff] (!%p1606_p5) }
  0x1b   : > { %1861 = vmatpush3.bf16.msra.mxu1 (!%p1606_p5), %v1803_v11  ;;  %1808 = vmatprep.subr.bf16.mxu0 (!%p1606_p5), %v1807_v15 }
  0x1c   : > { %1860 = vmatprep.subr.bf16.mxu1 (!%p1606_p5), %v1807_v15 }
  0x1e   : > { %1810 = vmatpush3.bf16.msra.mxu0 %v1807_v15 }
  0x1f   : > { %1862 = vmatpush3.bf16.msra.mxu1 %v1807_v15 }
  0x21   : > { %1704 = vmatmul.mubr.msk.f32.vlgmr.msra.gmra.mrb[0].mxu0 %vm338_vm0, %v320_v16 }
  0x22   : > { %1710 = vmatmul.mubr.msk.f32.vlgmr.msra.gmra.mrb[0].mxu1 %vm338_vm0, %v324_v17  ;;  %1706 = vmatprep.mubr.msk.f32.mxu0 %vm338_vm0, %v321_v18 }
  0x23   : > { %1712 = vmatprep.mubr.msk.f32.mxu1 %vm338_vm0, %v325_v19 }
  0x25   : > { %1707 = vmatmul.mubr.msk.f32.gmra.mrb[2].mxu0 %vm338_vm0, %v322_v20 }
  0x26   : > { %1713 = vmatmul.mubr.msk.f32.gmra.mrb[2].mxu1 %vm338_vm0, %v326_v21 }
  0xf4   : > { %v1705_v23 = vpop.f32.mrb[0].mxu0 }
  0xf5   : > { %v1711_v24 = vpop.f32.mrb[0].mxu1  ;;  %v435_v25 = vadd.f32 %v1705_v23, %v1607_v22  ;;  %v429_v27 = vpop.f32.mrb[1].mxu0 }
  0xf6   : > { %v455_v26 = vadd.f32 %v1711_v24, %v1607_v22  ;;  %v449_v28 = vpop.f32.mrb[1].mxu1  ;;  %v430_v29 = vadd.f32 %v1607_v22, %v429_v27 }
  0xf7   : > { %v450_v30 = vadd.f32 %v1607_v22, %v449_v28  ;;  %469 = vst [vmem:[#allocation3 + $0x8] sm:$0xff] %v435_v25 }
  0xf8   : > { %473 = vst [vmem:[#allocation3 + $0x28] sm:$0xff] %v455_v26  ;;  %468 = vst [vmem:[#allocation3] sm:$0xff] %v430_v29  ;;  %v1708_v31 = vpop.f32.mrb[2].mxu0 }
  0xf9   : > { %472 = vst [vmem:[#allocation3 + $0x20] sm:$0xff] %v450_v30  ;;  %v1714_v32 = vpop.f32.mrb[2].mxu1  ;;  %v445_v33 = vadd.f32 %v1708_v31, %v1607_v22  ;;  %v439_v35 = vpop.f32.mrb[3].mxu0 }
  0xfa   : > { %v465_v34 = vadd.f32 %v1714_v32, %v1607_v22  ;;  %v459_v36 = vpop.f32.mrb[3].mxu1  ;;  %v440_v37 = vadd.f32 %v1607_v22, %v439_v35 }
  0xfb   : > { %v460_v38 = vadd.f32 %v1607_v22, %v459_v36  ;;  %471 = vst [vmem:[#allocation3 + $0x18] sm:$0xff] %v445_v33 }
  0xfc   : > { %475 = vst [vmem:[#allocation3 + $0x38] sm:$0xff] %v465_v34  ;;  %470 = vst [vmem:[#allocation3 + $0x10] sm:$0xff] %v440_v37 }
  0xfd   : > { %474 = vst [vmem:[#allocation3 + $0x30] sm:$0xff] %v460_v38 }
  0xfe PF: > { %v476_v39 = vld [vmem:[%s2021_s9] sm:$0xff]  ;;  %v477_v40 = vld [vmem:[%s2021_s9 + $0x8] sm:$0xff]  ;;  %v478_v41 = vld [vmem:[%s2021_s9 + $0x10] sm:$0xff]  ;;  %v1952_v42 = vmov 0.0|0.0   ;;  %vm1953_vm1 = vmmov 0   ;;  %v1954_v45 = vmov 0.0  }
  0xff   : > { %1811 = vmatprep.subr.bf16.mxu0 %v1952_v42  ;;  %v2081_v43 = vpack.c.bf16 %v477_v40, %v476_v39  ;;  %v479_v44 = vld [vmem:[%s2021_s9 + $0x18] sm:$0xff]  ;;  %1723 = vmatprep.mubr.msk.f32.mxu0 %vm1953_vm1, %v1954_v45  ;;  %v2109_v47 = vld [vmem:[%s2242_s1] sm:$0xff]  ;;  %v1955_v48 = vmov 0   ;;  %s1956_s9 = smov 64   ;;  %s1957_s17 = smov 32   ;;  %vm482_vm3 = vcmask 261120  }
 0x100   : > { %1817 = vmatprep.subr.bf16.mxu1 %v1952_v42  ;;  %1734 = vmatprep.mubr.msk.f32.mxu1 %vm1953_vm1, %v1954_v45  ;;  %v2090_v46 = vpack.c.bf16 %v479_v44, %v478_v41  ;;  %vm580_vm2 = vcmp.gt.s32.totalorder %v2109_v47, 0  ;;  %v481_v51 = vld [vmem:[#allocation3] sm:$0xff]  ;;  %v604_v10 = vld [vmem:[#allocation3 + $0x8] sm:$0xff]  ;;  %vm704_vm4 = vcmp.gt.s32.totalorder %v2109_v47, 1  ;;  %vm829_vm5 = vcmp.gt.s32.totalorder %v2109_v47, 2  ;;  %s1958_s18 = smov 96  }
 0x101   : > { %1813 = vmatpush3.bf16.msra.mxu0 %v2081_v43  ;;  %1819 = vmatpush3.bf16.msra.mxu1 %v2081_v43  ;;  %v1617_v49 = vsel %vm580_vm2, 1.0, %v1954_v45  ;;  %v1620_v15 = vsel %vm704_vm4, 1.0, %v1954_v45  ;;  %v1623_v44 = vsel %vm829_vm5, 1.0, %v1954_v45  ;;  %vm954_vm6 = vcmp.gt.s32.totalorder %v2109_v47, 3 }
 0x102   : > { %1814 = vmatprep.subr.bf16.mxu0 %v1952_v42  ;;  %1820 = vmatprep.subr.bf16.mxu1 %v1952_v42  ;;  %v589_v50 = vsub.f32 1.0, %v1617_v49  ;;  %v713_v22 = vsub.f32 1.0, %v1620_v15  ;;  %vm1079_vm7 = vcmp.gt.s32.totalorder %v2109_v47, 4  ;;  %vm1204_vm8 = vcmp.gt.s32.totalorder %v2109_v47, 5 }
 0x103   : > { %1878 = vset.pattern.permute.xlu1 %v1955_v48  ;;  %1879 = vset.pattern.permute.xlu0 %v1955_v48  ;;  %v729_v37 = vld [vmem:[#allocation3 + $0x10] sm:$0xff]  ;;  %vm1329_vm9 = vcmp.gt.s32.totalorder %v2109_v47, 6  ;;  %vm1454_vm10 = vcmp.gt.s32.totalorder %v2109_v47, 7 }
 0x104   : > { %585 = vperm.xlu1 %1878, %v1617_v49  }
 0x105   : > { %1816 = vmatpush3.bf16.msra.mxu0 %v2090_v46  ;;  %1822 = vmatpush3.bf16.msra.mxu1 %v2090_v46 }
 0x106   : > { %1823 = vmatprep.subr.bf16.mxu0 %v1952_v42  ;;  %1829 = vmatprep.subr.bf16.mxu1 %v1952_v42 }
 0x108   : > { %1724 = vmatmul.mubr.f32.vlgmr.msra.gmra.mrb[0].mxu0 %v1954_v45  ;;  %592 = vperm.xlu1 %1878, %v589_v50  }
 0x109   : > { %1825 = vmatpush3.bf16.msra.mxu0 %v2081_v43  ;;  %1745 = vmatprep.mubr.msk.f32.mxu0 %vm1953_vm1, %v1954_v45 }
 0x10a   : > { %1826 = vmatprep.subr.bf16.mxu0 %v1952_v42 }
 0x10d   : > { %1828 = vmatpush3.bf16.msra.mxu0 %v2090_v46 }
 0x10e   : > { %1835 = vmatprep.subr.bf16.mxu0 %v1952_v42 }
 0x183   : > { %v586_v2 = vpop.permute.xlu1 %585 }
 0x187   : > { %v593_v3 = vpop.permute.xlu1 %592 }
 0x188   : > { %v595_v6 = vmul.f32 0.0, %v593_v3 }
 0x1db   : > { %v552_v52 = vpop.f32.mrb[0].mxu0 }
 0x1dc   : > { %v553_v53 = vadd.f32 %v552_v52, %v481_v51  ;;  %v1725_v54 = vpop.f32.mrb[1].mxu0 }
 0x1dd   : > { %v838_v54 = vsub.f32 1.0, %v1623_v44 }
 0x1de   : > { %1880 = vtanh.f32 %v553_v53  ;;  %v1616_v56 = vmul.f32 -1.442695, %v553_v53 }
 0x1e0   : > { %1882 = vpow2.f32 %v1616_v56 }
 0x1e8   : > { %v1881_v55 = vpop.eup %1880 }
 0x1e9   : > { %565 = vrot.lane.b32.xlu0 %v1881_v55, %s1956_s9 }
 0x1ea   : > { %v1883_v57 = vpop.eup %1882 }
 0x1eb   : > { %v559_v58 = vadd.f32 1.0, %v1883_v57 }
 0x1ed   : > { %1884 = vrcp.f32 %v559_v58 }
 0x1f7   : > { %v1885_v59 = vpop.eup %1884 }
 0x1f8   : > { %v563_v62 = vmul.f32 0.0, %v1885_v59 }
 0x25b   : > { %v566_v60 = vpop.permute.xlu0 %565 }
 0x25c   : > { %v568_v61 = vmul.f32 %v1885_v59, %v566_v60 }
 0x25e   : > { %570 = vrot.lane.b32.xlu0 %v568_v61, %s1957_s17 }
 0x2d0   : > { %v571_v63 = vpop.permute.xlu0 %570 }
 0x2d1   : > { %v573_v0 = vadd.f32 %v571_v63, %v563_v62 }
 0x2d3   : > { %1886 = vtanh.f32 %v573_v0  ;;  %v597_v23 = vmul.f32 %v586_v2, %v573_v0 }
 0x2d5   : > { %v598_v24 = vadd.f32 %v597_v23, %v595_v6 }
 0x2dd   : > { %v1887_v1 = vpop.eup %1886 }
 0x2de   : > { %576 = vrot.lane.b32.xlu0 %v1887_v1, %s1956_s9 }
 0x350   : > { %v577_v4 = vpop.permute.xlu0 %576 }
 0x351   : > { %v579_v5 = vmul.f32 %v1885_v59, %v577_v4 }
 0x353   : > { %v2116_v7 = vmul.f32 %v586_v2, %v579_v5 }
 0x355   : > { %v596_v8 = vadd.f32 %v595_v6, %v2116_v7  ;;  %v854_v6 = vld [vmem:[#allocation3 + $0x18] sm:$0xff] }
 0x357   : > { %606 = vrot.lane.b32.xlu1 %v596_v8, %s1957_s17 }
 0x3c9   : > { %v607_v9 = vpop.permute.xlu1 %606 }
 0x3ca   : > { %1735 = vmatmul.mubr.msk.f32.vlgmr.msra.gmra.mrb[0].mxu1 %vm482_vm3, %v607_v9 }
 0x3cb   : > { %1831 = vmatpush3.bf16.msra.mxu1 %v2081_v43  ;;  %1756 = vmatprep.mubr.msk.f32.mxu1 %vm1953_vm1, %v1954_v45 }
 0x3cc   : > { %1832 = vmatprep.subr.bf16.mxu1 %v1952_v42 }
 0x3cf   : > { %1834 = vmatpush3.bf16.msra.mxu1 %v2090_v46 }
 0x3d0   : > { %1841 = vmatprep.subr.bf16.mxu1 %v1952_v42 }
 0x49d   : > { %v676_v11 = vpop.f32.mrb[0].mxu1 }
 0x49e   : > { %v677_v12 = vadd.f32 %v676_v11, %v604_v10  ;;  %v1736_v13 = vpop.f32.mrb[1].mxu1 }
 0x4a0   : > { %1888 = vtanh.f32 %v677_v12  ;;  %v1619_v16 = vmul.f32 -1.442695, %v677_v12  ;;  %v1626_v12 = vsel %vm954_vm6, 1.0, %v1954_v45 }
 0x4a2   : > { %1890 = vpow2.f32 %v1619_v16 }
 0x4aa   : > { %v1889_v14 = vpop.eup %1888 }
 0x4ab   : > { %689 = vrot.lane.b32.xlu0 %v1889_v14, %s1956_s9 }
 0x4ac   : > { %v1891_v17 = vpop.eup %1890 }
 0x4ad   : > { %v683_v18 = vadd.f32 1.0, %v1891_v17 }
 0x4af   : > { %709 = vperm.xlu0 %1879, %v1620_v15   ;;  %1892 = vrcp.f32 %v683_v18 }
 0x4b9   : > { %v1893_v19 = vpop.eup %1892 }
 0x4ba   : > { %v687_v25 = vmul.f32 %v1893_v19, %v598_v24 }
 0x51d   : > { %v690_v20 = vpop.permute.xlu0 %689 }
 0x51e   : > { %v692_v21 = vmul.f32 %v1893_v19, %v690_v20 }
 0x520   : > { %694 = vrot.lane.b32.xlu1 %v692_v21, %s1957_s17 }
 0x524   : > { %716 = vperm.xlu1 %1878, %v713_v22  }
 0x52e   : > { %v710_v32 = vpop.permute.xlu0 %709 }
 0x592   : > { %v695_v26 = vpop.permute.xlu1 %694 }
 0x593   : > { %v697_v27 = vadd.f32 %v695_v26, %v687_v25 }
 0x595   : > { %1894 = vtanh.f32 %v697_v27  ;;  %v721_v56 = vmul.f32 %v710_v32, %v697_v27 }
 0x59f   : > { %v1895_v28 = vpop.eup %1894 }
 0x5a0   : > { %700 = vrot.lane.b32.xlu1 %v1895_v28, %s1956_s9 }
 0x5a3   : > { %v717_v29 = vpop.permute.xlu1 %716 }
 0x5a4   : > { %v719_v33 = vmul.f32 %v717_v29, %v596_v8  ;;  %v722_v55 = vmul.f32 %v717_v29, %v598_v24 }
 0x5a6   : > { %v723_v57 = vadd.f32 %v722_v55, %v721_v56 }
 0x612   : > { %v701_v30 = vpop.permute.xlu1 %700 }
 0x613   : > { %v703_v31 = vmul.f32 %v1893_v19, %v701_v30  ;;  %v963_v19 = vsub.f32 1.0, %v1626_v12 }
 0x615   : > { %v2132_v34 = vmul.f32 %v710_v32, %v703_v31 }
 0x617   : > { %v720_v35 = vadd.f32 %v719_v33, %v2132_v34 }
 0x619   : > { %731 = vrot.lane.b32.xlu0 %v720_v35, %s1957_s17 }
 0x68b   : > { %v732_v36 = vpop.permute.xlu0 %731 }
 0x68c   : > { %1746 = vmatmul.mubr.msk.f32.vlgmr.msra.gmra.mrb[2].mxu0 %vm482_vm3, %v732_v36  ;;  %v979_v36 = vld [vmem:[#allocation3 + $0x20] sm:$0xff] }
 0x68d   : > { %1837 = vmatpush3.bf16.msra.mxu0 %v2081_v43  ;;  %1767 = vmatprep.mubr.msk.f32.mxu0 %vm1953_vm1, %v1954_v45 }
 0x68e   : > { %1838 = vmatprep.subr.bf16.mxu0 %v1952_v42 }
 0x691   : > { %1840 = vmatpush3.bf16.msra.mxu0 %v2090_v46 }
 0x692   : > { %1847 = vmatprep.subr.bf16.mxu0 %v1952_v42 }
 0x75f   : > { %v801_v38 = vpop.f32.mrb[2].mxu0 }
 0x760   : > { %v802_v39 = vadd.f32 %v801_v38, %v729_v37  ;;  %v1747_v40 = vpop.f32.mrb[3].mxu0 }
 0x762   : > { %1896 = vtanh.f32 %v802_v39  ;;  %v1622_v48 = vmul.f32 -1.442695, %v802_v39 }
 0x764   : > { %1898 = vpow2.f32 %v1622_v48 }
 0x76c   : > { %v1897_v41 = vpop.eup %1896 }
 0x76d   : > { %814 = vrot.lane.b32.xlu1 %v1897_v41, %s1956_s9  ;;  %v1629_v41 = vsel %vm1079_vm7, 1.0, %v1954_v45 }
 0x76e   : > { %v1899_v49 = vpop.eup %1898 }
 0x76f   : > { %v808_v50 = vadd.f32 1.0, %v1899_v49 }
 0x771   : > { %834 = vperm.xlu1 %1878, %v1623_v44   ;;  %1900 = vrcp.f32 %v808_v50 }
 0x77b   : > { %v1901_v51 = vpop.eup %1900 }
 0x77c   : > { %v812_v58 = vmul.f32 %v1901_v51, %v723_v57 }
 0x7df   : > { %v815_v52 = vpop.permute.xlu1 %814 }
 0x7e0   : > { %v817_v53 = vmul.f32 %v1901_v51, %v815_v52 }
 0x7e2   : > { %819 = vrot.lane.b32.xlu0 %v817_v53, %s1957_s17  ;;  %v1088_v53 = vsub.f32 1.0, %v1629_v41 }
 0x7e6   : > { %841 = vperm.xlu0 %1879, %v838_v54  }
 0x7f0   : > { %v835_v62 = vpop.permute.xlu1 %834 }
 0x854   : > { %v820_v59 = vpop.permute.xlu0 %819 }
 0x855   : > { %v822_v60 = vadd.f32 %v820_v59, %v812_v58 }
 0x857   : > { %1902 = vtanh.f32 %v822_v60  ;;  %v846_v21 = vmul.f32 %v835_v62, %v822_v60 }
 0x861   : > { %v1903_v61 = vpop.eup %1902 }
 0x862   : > { %825 = vrot.lane.b32.xlu1 %v1903_v61, %s1956_s9 }
 0x865   : > { %v842_v63 = vpop.permute.xlu0 %841 }
 0x866   : > { %v844_v2 = vmul.f32 %v842_v63, %v720_v35  ;;  %v847_v20 = vmul.f32 %v842_v63, %v723_v57 }
 0x868   : > { %v848_v22 = vadd.f32 %v847_v20, %v846_v21 }
 0x8d4   : > { %v826_v0 = vpop.permute.xlu1 %825 }
 0x8d5   : > { %v828_v1 = vmul.f32 %v1901_v51, %v826_v0 }
 0x8d7   : > { %v2148_v3 = vmul.f32 %v835_v62, %v828_v1 }
 0x8d9   : > { %v845_v4 = vadd.f32 %v844_v2, %v2148_v3 }
 0x8db   : > { %856 = vrot.lane.b32.xlu0 %v845_v4, %s1957_s17 }
 0x94d   : > { %v857_v5 = vpop.permute.xlu0 %856 }
 0x94e   : > { %1757 = vmatmul.mubr.msk.f32.vlgmr.msra.gmra.mrb[2].mxu1 %vm482_vm3, %v857_v5 }
 0x94f   : > { %1843 = vmatpush3.bf16.msra.mxu1 %v2081_v43  ;;  %1778 = vmatprep.mubr.msk.f32.mxu1 %vm1953_vm1, %v1954_v45 }
 0x950   : > { %1844 = vmatprep.subr.bf16.mxu1 %v1952_v42 }
 0x953   : > { %1846 = vmatpush3.bf16.msra.mxu1 %v2090_v46 }
 0x954   : > { %1853 = vmatprep.subr.bf16.mxu1 %v1952_v42 }
 0xa21   : > { %v926_v8 = vpop.f32.mrb[2].mxu1 }
 0xa22   : > { %v927_v9 = vadd.f32 %v926_v8, %v854_v6  ;;  %v1758_v10 = vpop.f32.mrb[3].mxu1  ;;  %v1104_v6 = vld [vmem:[#allocation3 + $0x28] sm:$0xff] }
 0xa24   : > { %1904 = vtanh.f32 %v927_v9  ;;  %v1625_v13 = vmul.f32 -1.442695, %v927_v9 }
 0xa26   : > { %1906 = vpow2.f32 %v1625_v13 }
 0xa2e   : > { %v1905_v11 = vpop.eup %1904 }
 0xa2f   : > { %939 = vrot.lane.b32.xlu1 %v1905_v11, %s1956_s9 }
 0xa30   : > { %v1907_v14 = vpop.eup %1906 }
 0xa31   : > { %v933_v15 = vadd.f32 1.0, %v1907_v14 }
 0xa33   : > { %959 = vperm.xlu1 %1878, %v1626_v12   ;;  %1908 = vrcp.f32 %v933_v15  ;;  %v1632_v12 = vsel %vm1204_vm8, 1.0, %v1954_v45 }
 0xa3d   : > { %v1909_v16 = vpop.eup %1908 }
 0xa3e   : > { %v937_v23 = vmul.f32 %v1909_v16, %v848_v22 }
 0xaa1   : > { %v940_v17 = vpop.permute.xlu1 %939 }
 0xaa2   : > { %v942_v18 = vmul.f32 %v1909_v16, %v940_v17 }
 0xaa4   : > { %944 = vrot.lane.b32.xlu0 %v942_v18, %s1957_s17 }
 0xaa8   : > { %966 = vperm.xlu0 %1879, %v963_v19  }
 0xab2   : > { %v960_v27 = vpop.permute.xlu1 %959 }
 0xb16   : > { %v945_v24 = vpop.permute.xlu0 %944 }
 0xb17   : > { %v947_v25 = vadd.f32 %v945_v24, %v937_v23 }
 0xb19   : > { %1910 = vtanh.f32 %v947_v25  ;;  %v971_v55 = vmul.f32 %v960_v27, %v947_v25 }
 0xb23   : > { %v1911_v26 = vpop.eup %1910 }
 0xb24   : > { %950 = vrot.lane.b32.xlu1 %v1911_v26, %s1956_s9 }
 0xb27   : > { %v967_v28 = vpop.permute.xlu0 %966 }
 0xb28   : > { %v969_v31 = vmul.f32 %v967_v28, %v845_v4  ;;  %v972_v54 = vmul.f32 %v967_v28, %v848_v22 }
 0xb2a   : > { %v973_v56 = vadd.f32 %v972_v54, %v971_v55 }
 0xb96   : > { %v951_v29 = vpop.permute.xlu1 %950 }
 0xb97   : > { %v953_v30 = vmul.f32 %v1909_v16, %v951_v29  ;;  %v1213_v16 = vsub.f32 1.0, %v1632_v12 }
 0xb99   : > { %v2164_v32 = vmul.f32 %v960_v27, %v953_v30 }
 0xb9b   : > { %v970_v33 = vadd.f32 %v969_v31, %v2164_v32 }
 0xb9d   : > { %981 = vrot.lane.b32.xlu0 %v970_v33, %s1957_s17 }
 0xc0f   : > { %v982_v35 = vpop.permute.xlu0 %981 }
 0xc10   : > { %1768 = vmatmul.mubr.msk.f32.vlgmr.msra.gmra.mrb[4].mxu0 %vm482_vm3, %v982_v35 }
 0xc11   : > { %1849 = vmatpush3.bf16.msra.mxu0 %v2081_v43  ;;  %1789 = vmatprep.mubr.msk.f32.mxu0 %vm1953_vm1, %v1954_v45 }
 0xc12   : > { %1850 = vmatprep.subr.bf16.mxu0 %v1952_v42 }
 0xc15   : > { %1852 = vmatpush3.bf16.msra.mxu0 %v2090_v46 }
 0xce3   : > { %v1051_v37 = vpop.f32.mrb[4].mxu0 }
 0xce4   : > { %v1052_v38 = vadd.f32 %v1051_v37, %v979_v36  ;;  %v1769_v39 = vpop.f32.mrb[5].mxu0 }
 0xce5   : > { %v1635_v39 = vsel %vm1329_vm9, 1.0, %v1954_v45 }
 0xce6   : > { %1912 = vtanh.f32 %v1052_v38  ;;  %v1628_v44 = vmul.f32 -1.442695, %v1052_v38 }
 0xce8   : > { %1914 = vpow2.f32 %v1628_v44 }
 0xcf0   : > { %v1913_v40 = vpop.eup %1912 }
 0xcf1   : > { %1064 = vrot.lane.b32.xlu1 %v1913_v40, %s1956_s9 }
 0xcf2   : > { %v1915_v48 = vpop.eup %1914 }
 0xcf3   : > { %v1058_v49 = vadd.f32 1.0, %v1915_v48 }
 0xcf5   : > { %1084 = vperm.xlu1 %1878, %v1629_v41   ;;  %1916 = vrcp.f32 %v1058_v49 }
 0xcff   : > { %v1917_v50 = vpop.eup %1916 }
 0xd00   : > { %v1062_v57 = vmul.f32 %v1917_v50, %v973_v56 }
 0xd63   : > { %v1065_v51 = vpop.permute.xlu1 %1064 }
 0xd64   : > { %v1067_v52 = vmul.f32 %v1917_v50, %v1065_v51  ;;  %v1338_v51 = vsub.f32 1.0, %v1635_v39 }
 0xd66   : > { %1069 = vrot.lane.b32.xlu0 %v1067_v52, %s1957_s17 }
 0xd6a   : > { %1091 = vperm.xlu0 %1879, %v1088_v53  }
 0xd74   : > { %v1085_v61 = vpop.permute.xlu1 %1084 }
 0xdd8   : > { %v1070_v58 = vpop.permute.xlu0 %1069 }
 0xdd9   : > { %v1072_v59 = vadd.f32 %v1070_v58, %v1062_v57 }
 0xddb   : > { %1918 = vtanh.f32 %v1072_v59  ;;  %v1096_v18 = vmul.f32 %v1085_v61, %v1072_v59 }
 0xde5   : > { %v1919_v60 = vpop.eup %1918 }
 0xde6   : > { %1075 = vrot.lane.b32.xlu1 %v1919_v60, %s1956_s9 }
 0xde9   : > { %v1092_v62 = vpop.permute.xlu0 %1091 }
 0xdea   : > { %v1094_v1 = vmul.f32 %v1092_v62, %v970_v33  ;;  %v1097_v17 = vmul.f32 %v1092_v62, %v973_v56  ;;  %v1229_v33 = vld [vmem:[#allocation3 + $0x30] sm:$0xff] }
 0xdec   : > { %v1098_v19 = vadd.f32 %v1097_v17, %v1096_v18 }
 0xe58   : > { %v1076_v63 = vpop.permute.xlu1 %1075 }
 0xe59   : > { %v1078_v0 = vmul.f32 %v1917_v50, %v1076_v63 }
 0xe5b   : > { %v2179_v2 = vmul.f32 %v1085_v61, %v1078_v0 }
 0xe5d   : > { %v1095_v4 = vadd.f32 %v1094_v1, %v2179_v2 }
 0xe5f   : > { %1106 = vrot.lane.b32.xlu0 %v1095_v4, %s1957_s17 }
 0xed1   : > { %v1107_v5 = vpop.permute.xlu0 %1106 }
 0xed2   : > { %1779 = vmatmul.mubr.msk.f32.vlgmr.msra.gmra.mrb[4].mxu1 %vm482_vm3, %v1107_v5  ;;  %v1354_v5 = vld [vmem:[#allocation3 + $0x38] sm:$0xff] }
 0xed3   : > { %1855 = vmatpush3.bf16.msra.mxu1 %v2081_v43  ;;  %1800 = vmatprep.mubr.msk.f32.mxu1 %vm1953_vm1, %v1954_v45 }
 0xed4   : > { %1856 = vmatprep.subr.bf16.mxu1 %v1952_v42 }
 0xed7   : > { %1858 = vmatpush3.bf16.msra.mxu1 %v2090_v46 }
 0xfa5   : > { %v1176_v8 = vpop.f32.mrb[4].mxu1 }
 0xfa6   : > { %v1177_v9 = vadd.f32 %v1176_v8, %v1104_v6  ;;  %v1780_v10 = vpop.f32.mrb[5].mxu1 }
 0xfa8   : > { %1920 = vtanh.f32 %v1177_v9  ;;  %v1631_v43 = vmul.f32 -1.442695, %v1177_v9 }
 0xfaa   : > { %1922 = vpow2.f32 %v1631_v43 }
 0xfb2   : > { %v1921_v11 = vpop.eup %1920 }
 0xfb3   : > { %1189 = vrot.lane.b32.xlu1 %v1921_v11, %s1956_s9  ;;  %v1638_v11 = vsel %vm1454_vm10, 1.0, %v1954_v45 }
 0xfb4   : > { %v1923_v13 = vpop.eup %1922 }
 0xfb5   : > { %v1183_v14 = vadd.f32 1.0, %v1923_v13 }
 0xfb7   : > { %1209 = vperm.xlu1 %1878, %v1632_v12   ;;  %1924 = vrcp.f32 %v1183_v14 }
 0xfc1   : > { %v1925_v42 = vpop.eup %1924 }
 0xfc2   : > { %v1187_v20 = vmul.f32 %v1925_v42, %v1098_v19 }
0x1025   : > { %v1190_v46 = vpop.permute.xlu1 %1189 }
0x1026   : > { %v1192_v15 = vmul.f32 %v1925_v42, %v1190_v46 }
0x1028   : > { %1194 = vrot.lane.b32.xlu0 %v1192_v15, %s1957_s17  ;;  %v1463_v15 = vsub.f32 1.0, %v1638_v11 }
0x102c   : > { %1216 = vperm.xlu0 %1879, %v1213_v16  }
0x1036   : > { %v1210_v24 = vpop.permute.xlu1 %1209 }
0x109a   : > { %v1195_v21 = vpop.permute.xlu0 %1194 }
0x109b   : > { %v1197_v22 = vadd.f32 %v1195_v21, %v1187_v20 }
0x109d   : > { %1926 = vtanh.f32 %v1197_v22  ;;  %v1221_v53 = vmul.f32 %v1210_v24, %v1197_v22 }
0x10a7   : > { %v1927_v23 = vpop.eup %1926 }
0x10a8   : > { %1200 = vrot.lane.b32.xlu1 %v1927_v23, %s1956_s9 }
0x10ab   : > { %v1217_v25 = vpop.permute.xlu0 %1216 }
0x10ac   : > { %v1219_v28 = vmul.f32 %v1217_v25, %v1095_v4  ;;  %v1222_v52 = vmul.f32 %v1217_v25, %v1098_v19 }
0x10ae   : > { %v1223_v54 = vadd.f32 %v1222_v52, %v1221_v53 }
0x111a   : > { %v1201_v26 = vpop.permute.xlu1 %1200 }
0x111b   : > { %v1203_v27 = vmul.f32 %v1925_v42, %v1201_v26 }
0x111d   : > { %v2194_v29 = vmul.f32 %v1210_v24, %v1203_v27 }
0x111f   : > { %v1220_v30 = vadd.f32 %v1219_v28, %v2194_v29 }
0x1121   : > { %1231 = vrot.lane.b32.xlu0 %v1220_v30, %s1957_s17 }
0x1193   : > { %v1232_v31 = vpop.permute.xlu0 %1231 }
0x1194   : > { %1790 = vmatmul.mubr.msk.f32.vlgmr.msra.gmra.mrb[6].mxu0 %vm482_vm3, %v1232_v31 }
0x1267   : > { %v1301_v35 = vpop.f32.mrb[6].mxu0 }
0x1268   : > { %v1302_v36 = vadd.f32 %v1301_v35, %v1229_v33  ;;  %v1791_v37 = vpop.f32.mrb[7].mxu0 }
0x126a   : > { %1928 = vtanh.f32 %v1302_v36  ;;  %v1634_v40 = vmul.f32 -1.442695, %v1302_v36 }
0x126c   : > { %1930 = vpow2.f32 %v1634_v40 }
0x1274   : > { %v1929_v38 = vpop.eup %1928 }
0x1275   : > { %1314 = vrot.lane.b32.xlu1 %v1929_v38, %s1956_s9 }
0x1276   : > { %v1931_v41 = vpop.eup %1930 }
0x1277   : > { %v1308_v44 = vadd.f32 1.0, %v1931_v41 }
0x1279   : > { %1334 = vperm.xlu1 %1878, %v1635_v39   ;;  %1932 = vrcp.f32 %v1308_v44 }
0x1283   : > { %v1933_v48 = vpop.eup %1932 }
0x1284   : > { %v1312_v55 = vmul.f32 %v1933_v48, %v1223_v54 }
0x12e7   : > { %v1315_v49 = vpop.permute.xlu1 %1314 }
0x12e8   : > { %v1317_v50 = vmul.f32 %v1933_v48, %v1315_v49 }
0x12ea   : > { %1319 = vrot.lane.b32.xlu0 %v1317_v50, %s1957_s17 }
0x12ee   : > { %1341 = vperm.xlu0 %1879, %v1338_v51  }
0x12f8   : > { %v1335_v59 = vpop.permute.xlu1 %1334 }
0x135c   : > { %v1320_v56 = vpop.permute.xlu0 %1319 }
0x135d   : > { %v1322_v57 = vadd.f32 %v1320_v56, %v1312_v55 }
0x135f   : > { %1934 = vtanh.f32 %v1322_v57  ;;  %v1346_v47 = vmul.f32 %v1335_v59, %v1322_v57 }
0x1369   : > { %v1935_v58 = vpop.eup %1934 }
0x136a   : > { %1325 = vrot.lane.b32.xlu1 %v1935_v58, %s1956_s9 }
0x136d   : > { %v1342_v60 = vpop.permute.xlu0 %1341 }
0x136e   : > { %v1344_v63 = vmul.f32 %v1342_v60, %v1220_v30  ;;  %v1347_v45 = vmul.f32 %v1342_v60, %v1223_v54 }
0x1370   : > { %v1348_v16 = vadd.f32 %v1347_v45, %v1346_v47 }
0x13dc   : > { %v1326_v61 = vpop.permute.xlu1 %1325 }
0x13dd   : > { %v1328_v62 = vmul.f32 %v1933_v48, %v1326_v61 }
0x13df   : > { %v1337_v0 = vmul.f32 %v1335_v59, %v1328_v62 }
0x13e1   : > { %v1345_v1 = vadd.f32 %v1344_v63, %v1337_v0 }
0x13e3   : > { %1356 = vrot.lane.b32.xlu0 %v1345_v1, %s1957_s17 }
0x1455   : > { %v1357_v4 = vpop.permute.xlu0 %1356 }
0x1456   : > { %1801 = vmatmul.mubr.msk.f32.vlgmr.msra.gmra.mrb[6].mxu1 %vm482_vm3, %v1357_v4 }
0x1529   : > { %v1426_v6 = vpop.f32.mrb[6].mxu1 }
0x152a   : > { %v1427_v8 = vadd.f32 %v1426_v6, %v1354_v5  ;;  %v1802_v9 = vpop.f32.mrb[7].mxu1 }
0x152c   : > { %1936 = vtanh.f32 %v1427_v8  ;;  %v1637_v12 = vmul.f32 -1.442695, %v1427_v8 }
0x152e   : > { %1938 = vpow2.f32 %v1637_v12 }
0x1536   : > { %v1937_v10 = vpop.eup %1936 }
0x1537   : > { %1439 = vrot.lane.b32.xlu1 %v1937_v10, %s1956_s9 }
0x1538   : > { %v1939_v43 = vpop.eup %1938 }
0x1539   : > { %v1433_v13 = vadd.f32 1.0, %v1939_v43 }
0x153b   : > { %1459 = vperm.xlu1 %1878, %v1638_v11   ;;  %1940 = vrcp.f32 %v1433_v13 }
0x1545   : > { %v1941_v14 = vpop.eup %1940 }
0x1546   : > { %v1437_v17 = vmul.f32 %v1941_v14, %v1348_v16 }
0x15a9   : > { %v1440_v42 = vpop.permute.xlu1 %1439 }
0x15aa   : > { %v1442_v46 = vmul.f32 %v1941_v14, %v1440_v42 }
0x15ac   : > { %1444 = vrot.lane.b32.xlu0 %v1442_v46, %s1957_s17 }
0x15b0   : > { %1466 = vperm.xlu0 %1879, %v1463_v15  }
0x15b4   : > { %600 = vrot.lane.b32.xlu0 %v2116_v7, %s1957_s17 }
0x15b8   : > { %850 = vrot.lane.b32.xlu0 %v2148_v3, %s1957_s17 }
0x15ba   : > { %v1460_v21 = vpop.permute.xlu1 %1459 }
0x15bc   : > { %1100 = vrot.lane.b32.xlu0 %v2179_v2, %s1957_s17 }
0x15c0   : > { %1350 = vrot.lane.b32.xlu0 %v1337_v0, %s1957_s17 }
0x161e   : > { %v1445_v18 = vpop.permute.xlu0 %1444 }
0x161f   : > { %v1447_v19 = vadd.f32 %v1445_v18, %v1437_v17 }
0x1621   : > { %1942 = vtanh.f32 %v1447_v19  ;;  %v1471_v22 = vmul.f32 %v1460_v21, %v1447_v19 }
0x162b   : > { %v1943_v20 = vpop.eup %1942 }
0x162c   : > { %1450 = vrot.lane.b32.xlu1 %v1943_v20, %s1956_s9 }
0x162f   : > { %v1467_v7 = vpop.permute.xlu0 %1466 }
0x1630   : > { %v1472_v23 = vmul.f32 %v1467_v7, %v1348_v16  ;;  %725 = vrot.lane.b32.xlu1 %v2132_v34, %s1957_s17  ;;  %v1469_v28 = vmul.f32 %v1467_v7, %v1345_v1 }
0x1632   : > { %v1473_v3 = vadd.f32 %v1472_v23, %v1471_v22 }
0x1633   : > { %v601_v2 = vpop.permute.xlu0 %600 }
0x1634   : > { %603 = vst.msk [vmem:[#allocation2] sm:$0xff] %vm482_vm3, %v601_v2  ;;  %975 = vrot.lane.b32.xlu1 %v2164_v32, %s1957_s17 }
0x1637   : > { %v851_v24 = vpop.permute.xlu0 %850 }
0x1638   : > { %853 = vst.msk [vmem:[#allocation2 + $0x10] sm:$0xff] %vm482_vm3, %v851_v24  ;;  %1225 = vrot.lane.b32.xlu1 %v2194_v29, %s1957_s17 }
0x163b   : > { %v1101_v25 = vpop.permute.xlu0 %1100 }
0x163c   : > { %1103 = vst.msk [vmem:[#allocation2 + $0x20] sm:$0xff] %vm482_vm3, %v1101_v25 }
0x163f   : > { %v1351_v26 = vpop.permute.xlu0 %1350 }
0x1640   : > { %1353 = vst.msk [vmem:[#allocation2 + $0x30] sm:$0xff] %vm482_vm3, %v1351_v26 }
0x169e   : > { %v1451_v34 = vpop.permute.xlu1 %1450 }
0x169f   : > { %v1453_v27 = vmul.f32 %v1941_v14, %v1451_v34 }
0x16a1   : > { %v1462_v30 = vmul.f32 %v1460_v21, %v1453_v27 }
0x16a2   : > { %v726_v31 = vpop.permute.xlu1 %725 }
0x16a3   : > { %728 = vst.msk [vmem:[#allocation2 + $0x8] sm:$0xff] %vm482_vm3, %v726_v31  ;;  %1475 = vrot.lane.b32.xlu1 %v1462_v30, %s1957_s17  ;;  %v1470_v32 = vadd.f32 %v1469_v28, %v1462_v30 }
0x16a5   : > { %1480 = vrot.lane.b32.xlu0 %v1470_v32, %s1957_s17 }
0x16a6   : > { %v976_v29 = vpop.permute.xlu1 %975 }
0x16a7   : > { %978 = vst.msk [vmem:[#allocation2 + $0x18] sm:$0xff] %vm482_vm3, %v976_v29  ;;  %1485 = vrot.lane.b32.xlu1 %v1473_v3, %s1958_s18 }
0x16aa   : > { %v1226_v33 = vpop.permute.xlu1 %1225 }
0x16ab   : > { %1228 = vst.msk [vmem:[#allocation2 + $0x28] sm:$0xff] %vm482_vm3, %v1226_v33 }
0x1715   : > { %v1476_v35 = vpop.permute.xlu1 %1475 }
0x1716   : > { %1478 = vst.msk [vmem:[#allocation2 + $0x38] sm:$0xff] %vm482_vm3, %v1476_v35 }
0x1717   : > { %v1481_v36 = vpop.permute.xlu0 %1480 }
0x1718   : > { %1483 = vst.msk [vmem:[%s2027_s13] sm:$0xff] %vm482_vm3, %v1481_v36 }
0x1719   : > { %v1486_v37 = vpop.permute.xlu1 %1485 }
0x171a   : > { %1488 = vst.msk [vmem:[%s2032_s16] sm:$0xff] %vm482_vm3, %v1486_v37 }
0x171b PF: > { %s17_s21 = sadd.s32 1, %s1950_s21  }
0x171c   : > { %p14_p6 = scmp.ge.s32.totalorder %s17_s21, 4  }
0x171e   :  { %16 = sbr.rel (!%p14_p6) target bundleno = 1 (0x1), region = 96 }

</bundles_post_ra>
